<compile_context>
chip_gen: v7x
topology: tpu7x:2x2x1
jax: 0.10.0
libtpu: 0.0.40
codegen_flags: <defaults>
</compile_context>

<pallas_src>
import functools

import jax
import jax.numpy as jnp
from jax import lax
from jax.experimental import pallas as pl
from jax.experimental.pallas import tpu as pltpu


def _round_up(v, m):
    return (v + m - 1) // m * m


def _brain_gnn_kernel(
    # per-edge-block inputs (VMEM, lane-dense)
    src_ref,      # [1, 1, TE] int32  edge_index[0] for this block (-1 = pad)
    dst_ref,      # [1, 1, TE] int32  edge_index[1] for this block (-1 = pad)
    re_ref,       # [TE, C]    f32    gate-scaled region-embedding rows (0 = pad)
    # whole-array inputs (VMEM, resident across the grid)
    x_ref,        # [N_pad, Dpad] f32   node features (zero-padded rows/lanes)
    basis_ref,    # [Dpad, C*Dpad] f32  B2[o, c*Dpad + i] = basis[c, i, o]
    gamma_ref,    # [1, Dpad]  f32      BN weight (zero-padded)
    beta_ref,     # [1, Dpad]  f32      BN bias   (zero-padded)
    scorew_ref,   # [1, Dpad]  f32      RPool score weight (zero-padded)
    # outputs (VMEM, resident: constant output block index)
    out_ref,      # [N_pad, Dpad] f32   accumulator -> normalized features
    score_ref,    # [N_pad, 128]  f32   RPool score broadcast across lanes
    *,
    n_real: int,
    scatter_dtype,
):
    f32 = jnp.float32
    n_pad, dpad = out_ref.shape
    te = src_ref.shape[-1]
    c = re_ref.shape[1]

    e_blk = pl.program_id(0)

    @pl.when(e_blk == 0)
    def _init():
        out_ref[...] = jnp.zeros_like(out_ref)

    src_row = src_ref[0]                  # [1, TE] int32
    dst_row = dst_ref[0]                  # [1, TE] int32
    node_iota = lax.broadcasted_iota(jnp.int32, (n_pad, te), 0)

    # ---- gather source-node features: one_hot(src)^T . x -> [TE, Dpad] ------
    # f32 one-hot keeps the gather numerically exact; padded edges (src == -1)
    # produce an all-zero one-hot column.
    src_oh_t = (src_row == node_iota).astype(f32)           # [N_pad, TE]
    x_src = lax.dot_general(
        src_oh_t, x_ref[...],
        dimension_numbers=(((0,), (0,)), ((), ())),
        preferred_element_type=f32)                          # [TE, Dpad]

    # ---- RaGConv message: one wide MXU matmul over all C communities --------
    # t2[:, c*Dpad + i] = sum_o x_src[:, o] * basis[c, i, o]
    t2 = jnp.dot(x_src, basis_ref[...], preferred_element_type=f32)  # [TE, C*Dpad]

    re_blk = re_ref[...]                                     # [TE, C] (gate folded)
    msg = re_blk[:, 0:1] * t2[:, 0:dpad]                     # c = 0 term
    for cc in range(1, c):                                   # C is small & static
        msg = msg + re_blk[:, cc:cc + 1] * t2[:, cc * dpad:(cc + 1) * dpad]

    # ---- scatter-add ("add" aggregation) ------------------------------------
    # Gate already folded into re_ref, so the one-hot is exactly 0/1 and a
    # bf16 cast of it is lossless; accumulation stays f32 in out_ref.
    dst_oh_t = (dst_row == node_iota).astype(scatter_dtype)  # [N_pad, TE]
    out_ref[...] += jnp.dot(dst_oh_t, msg.astype(scatter_dtype),
                            preferred_element_type=f32)      # [N_pad, Dpad]

    # ---- finalize: ReLU + BatchNorm + score projection ----------------------
    @pl.when(e_blk == pl.num_programs(0) - 1)
    def _finalize():
        # RaGConv ReLU and the block ReLU are idempotent -> single maximum.
        h = jnp.maximum(out_ref[...], 0.0)

        # BatchNorm1d, training-mode biased statistics, two-pass variance with
        # a closed-form correction for the (n_pad - n_real) all-zero pad rows.
        inv_n = 1.0 / float(n_real)
        mean = jnp.sum(h, axis=0, keepdims=True) * inv_n
        d = h - mean
        var = (jnp.sum(d * d, axis=0, keepdims=True)
               - float(n_pad - n_real) * mean * mean) * inv_n
        var = jnp.maximum(var, 0.0)
        hbn = d * lax.rsqrt(var + 1e-5) * gamma_ref[...] + beta_ref[...]
        # TODO(synk): nn.Dropout(0.1) in train mode is stochastic; applied here
        # as identity (eval semantics).  BN running stats are not updated.
        out_ref[...] = hbn

        # RPool score projection: VPU multiply + lane reduction, emitted as a
        # lane-dense [N_pad, 128] slab (no masked 1-lane partial stores).
        scores = jnp.sum(hbn * scorew_ref[...], axis=-1, keepdims=True)  # [N_pad,1]
        score_ref[...] = jnp.broadcast_to(scores, score_ref.shape)


def brain_gnn_block_forward(x, edge_index, edge_attr, region_indices, batch,
                            params, pool_ratio=0.5, *, edge_tile=512,
                            scatter_bf16=False):
    """Fused RaGConv + ReLU + BN + score, plus RPool glue in plain JAX.

    scatter_bf16=True runs only the scatter one-hot matmul in bf16 (lossless
    one-hot, msg rounded once, f32 accumulation) -- the v6e/v7x MXU throughput
    option.  The gather stays f32-exact in both modes.
    """
    f32 = jnp.float32
    N, Din = x.shape
    E = edge_index.shape[1]
    C, _, Dout = params["basis"].shape
    # The reference message einsum only type-checks under these constraints.
    assert N == E and Din == Dout, "reference semantics require N == E, Din == Dout"

    D = Dout
    Dpad = _round_up(D, 128)              # no +1 lane blow-up when D % 128 == 0
    N_pad = _round_up(N, 8)
    scatter_dtype = jnp.bfloat16 if scatter_bf16 else f32

    # ---- edge-tile choice: large TE (MXU K dim), capped by a v7x-safe budget
    TE = min(_round_up(edge_tile, 128), _round_up(E, 128))

    def _working_set(te):
        return (2 * 2 * N_pad * Dpad * 4          # x + out slab (double buffered)
                + N_pad * 128 * 4                 # score slab
                + 2 * Dpad * C * Dpad * 4         # basis2d
                + 2 * (2 * N_pad * te * 4         # src/dst one-hots
                       + te * (C + 2) * Dpad * 4))  # t2 + x_src + msg

    VMEM_BUDGET = 56 << 20                # fits v7x's 64 MiB physical VMEM
    while TE > 128 and _working_set(TE) > VMEM_BUDGET:
        TE -= 128
    E_pad = _round_up(E, TE)
    EB = E_pad // TE
    vmem_limit = int(min(max(_working_set(TE) + (8 << 20), 32 << 20), 64 << 20))

    # ---- wrapper-side layout plumbing (free at XLA level) --------------------
    # Edge gate (Linear(1,1) + sigmoid on one scalar per edge) hoisted to the
    # wrapper and FOLDED into the region-embedding rows (message is linear in
    # them), so the kernel never multiplies by the gate.
    gate = jax.nn.sigmoid(
        jnp.reshape(edge_attr.astype(f32), (E, -1))[:, 0] * params["ew_w"]
        + params["ew_b"])                                            # [E]
    re_edge = params["embedding"][region_indices].astype(f32) * gate[:, None]
    re_edge = jnp.pad(re_edge, ((0, E_pad - E), (0, 0)))             # [E_pad, C]

    src = jnp.pad(edge_index[0].astype(jnp.int32), (0, E_pad - E),
                  constant_values=-1).reshape(EB, 1, TE)
    dst = jnp.pad(edge_index[1].astype(jnp.int32), (0, E_pad - E),
                  constant_values=-1).reshape(EB, 1, TE)

    # x lane-padded to Dpad so gather output / basis K-dim are full 128-lane
    # tiles; kept f32 so the gather is exact in both precision modes.
    x_pad = jnp.pad(x.astype(f32), ((0, N_pad - N), (0, Dpad - Din)))

    # Basis relayout for one wide MXU matmul (literal 'nij,nj->ni' semantics
    # contracts over the *output* index o):  B2[o, c*Dpad + i] = basis[c, i, o]
    basis2d = jnp.transpose(params["basis"].astype(f32), (2, 0, 1))  # [o, c, i]
    basis2d = jnp.pad(basis2d, ((0, Dpad - D), (0, 0), (0, Dpad - D)))
    basis2d = basis2d.reshape(Dpad, C * Dpad)

    gamma = jnp.pad(params["bn_gamma"].astype(f32), (0, Dpad - D)).reshape(1, Dpad)
    beta = jnp.pad(params["bn_beta"].astype(f32), (0, Dpad - D)).reshape(1, Dpad)
    score_w = jnp.pad(params["score_w"].astype(f32), (0, Dpad - D)).reshape(1, Dpad)

    kernel = functools.partial(_brain_gnn_kernel, n_real=N,
                               scatter_dtype=scatter_dtype)

    flops_per_blk = (2 * N_pad * TE * Dpad            # gather
                     + 2 * TE * Dpad * C * Dpad       # basis mix
                     + 2 * N_pad * TE * Dpad)         # scatter
    cost = pl.CostEstimate(
        flops=int(EB * flops_per_blk),
        transcendentals=0,
        bytes_accessed=int(x_pad.size * 4 + basis2d.size * 4
                           + E_pad * (2 * 4 + C * 4)
                           + N_pad * Dpad * 4 + N_pad * 128 * 4),
    )

    # TODO(synk): single-buffer the grid-invariant operands (x, basis, params)
    # and triple-buffer the tiny per-edge inputs via pipeline_mode=pl.Buffered;
    # left at defaults here for portability.
    # TODO(synk): on v7x, shard the edge-block axis across both TensorCores
    # with per-core partial accumulators + a cross-core combine before BN.
    slab, score_slab = pl.pallas_call(
        kernel,
        out_shape=(jax.ShapeDtypeStruct((N_pad, Dpad), f32),
                   jax.ShapeDtypeStruct((N_pad, 128), f32)),
        grid=(EB,),
        in_specs=[
            pl.BlockSpec((1, 1, TE), lambda e: (e, 0, 0)),     # src
            pl.BlockSpec((1, 1, TE), lambda e: (e, 0, 0)),     # dst
            pl.BlockSpec((TE, C), lambda e: (e, 0)),           # gated region embed
            pl.BlockSpec((N_pad, Dpad), lambda e: (0, 0)),     # x (resident)
            pl.BlockSpec((Dpad, C * Dpad), lambda e: (0, 0)),  # basis2d (resident)
            pl.BlockSpec((1, Dpad), lambda e: (0, 0)),         # gamma
            pl.BlockSpec((1, Dpad), lambda e: (0, 0)),         # beta
            pl.BlockSpec((1, Dpad), lambda e: (0, 0)),         # score_w
        ],
        out_specs=(
            pl.BlockSpec((N_pad, Dpad), lambda e: (0, 0)),     # feature slab
            pl.BlockSpec((N_pad, 128), lambda e: (0, 0)),      # score slab
        ),
        compiler_params=pltpu.CompilerParams(
            dimension_semantics=("arbitrary",),
            vmem_limit_bytes=vmem_limit),
        cost_estimate=cost,
    )(src, dst, re_edge, x_pad, basis2d, gamma, beta, score_w)

    x_out = slab[:N, :D]
    scores = score_slab[:N, 0] + params["score_b"]

    # ---- RPool glue (data-dependent shapes stay in plain JAX) ----------------
    k = max(int(N * pool_ratio), 1)
    _, topk_idx = lax.top_k(scores, k)     # torch uses sorted=False; same index set
    x_pooled = x_out[topk_idx]
    region_pooled = region_indices[topk_idx]
    batch_pooled = batch[topk_idx]
    mask = jnp.zeros((N,), dtype=bool).at[topk_idx].set(True)
    edge_mask = mask[edge_index[0]] & mask[edge_index[1]]
    # TODO(synk): edge_index[:, edge_mask] / edge_attr[edge_mask] produce
    # data-dependent shapes; we return the boolean edge mask instead of compacting.
    return x_pooled, edge_mask, region_pooled, batch_pooled, scores


def _reference(x, edge_index, edge_attr, region_indices, params):
    """Pure-JAX reproduction of the fused hot path (for sanity checking)."""
    emb = params["embedding"][region_indices]                    # [N, C]
    K = jnp.einsum('nc,cio->nio', emb, params["basis"])          # [N, Din, Dout]
    src, dst = edge_index[0], edge_index[1]
    gate = jax.nn.sigmoid(edge_attr * params["ew_w"] + params["ew_b"])  # [E, 1]
    msg = jnp.einsum('nij,nj->ni', K, x[src]) * gate             # literal semantics
    agg = jnp.zeros((x.shape[0], K.shape[1]), jnp.float32).at[dst].add(msg)
    h = jnp.maximum(agg, 0.0)
    mean = h.mean(0, keepdims=True)
    var = ((h - mean) ** 2).mean(0, keepdims=True)
    h = (h - mean) / jnp.sqrt(var + 1e-5) * params["bn_gamma"] + params["bn_beta"]
    scores = h @ params["score_w"].reshape(-1, 1) + params["score_b"]
    return h, scores[:, 0]


if __name__ == "__main__":
    key = jax.random.PRNGKey(0)
    N = E = 64                 # reference einsum requires N == E
    Din = Dout = 32            # and input_dim == output_dim
    R, C = 8, 4                # num_regions, num_communities

    ks = jax.random.split(key, 10)
    x = jax.random.normal(ks[0], (N, Din), jnp.float32)
    edge_index = jax.random.randint(ks[1], (2, E), 0, N, dtype=jnp.int32)
    edge_attr = jax.random.normal(ks[2], (E, 1), jnp.float32)
    region_indices = jax.random.randint(ks[3], (N,), 0, R, dtype=jnp.int32)
    batch = jnp.zeros((N,), jnp.int32)

    params = {
        "embedding": jax.random.normal(ks[4], (R, C), jnp.float32),       # nn.Embedding
        "basis": jax.random.normal(ks[5], (C, Din, Dout), jnp.float32),   # basis_weights
        "ew_w": jax.random.uniform(ks[6], (), jnp.float32, -1.0, 1.0),    # Linear(1,1).weight
        "ew_b": jax.random.uniform(ks[7], (), jnp.float32, -1.0, 1.0),    # Linear(1,1).bias
        "bn_gamma": jnp.ones((Dout,), jnp.float32),                       # BN defaults
        "bn_beta": jnp.zeros((Dout,), jnp.float32),
        "score_w": jax.random.uniform(ks[8], (Dout,), jnp.float32,
                                      -1.0 / Dout ** 0.5, 1.0 / Dout ** 0.5),
        "score_b": jax.random.uniform(ks[9], (), jnp.float32,
                                      -1.0 / Dout ** 0.5, 1.0 / Dout ** 0.5),
    }

    # exact path (f32 gather + f32 scatter)
    outs = brain_gnn_block_forward(x, edge_index, edge_attr, region_indices,
                                   batch, params, pool_ratio=0.5)
    x_pooled, edge_mask, region_pooled, batch_pooled, scores = jax.block_until_ready(outs)

    # sanity check against the pure-JAX reference of the fused hot path
    h_ref, s_ref = _reference(x, edge_index, edge_attr, region_indices, params)
    k = max(int(N * 0.5), 1)
    _, idx_ref = lax.top_k(s_ref, k)
    assert jnp.allclose(scores, s_ref, rtol=1e-3, atol=1e-3), "score mismatch"
    assert jnp.allclose(x_pooled, h_ref[idx_ref], rtol=1e-3, atol=1e-3), "feature mismatch"
    assert x_pooled.shape == (k, Dout)

    # mixed-precision path (bf16 scatter matmul only) — loose check.
    outs_mp = brain_gnn_block_forward(x, edge_index, edge_attr, region_indices,
                                      batch, params, pool_ratio=0.5,
                                      scatter_bf16=True)
    scores_mp = jax.block_until_ready(outs_mp[4])
    assert jnp.allclose(scores_mp, s_ref, rtol=1e-1, atol=1e-1), "bf16 score drift"

    print("KERNEL_OK")
</pallas_src>

<mosaic_0001>
module attributes {stable_mosaic.version = 11 : i64} {
  func.func @_brain_gnn_kernel(%arg0: i32, %arg1: memref<1x1x128xi32, #tpu.memory_space<vmem>>, %arg2: memref<1x1x128xi32, #tpu.memory_space<vmem>>, %arg3: memref<128x4xf32, #tpu.memory_space<vmem>>, %arg4: memref<64x128xf32, #tpu.memory_space<vmem>>, %arg5: memref<128x512xf32, #tpu.memory_space<vmem>>, %arg6: memref<1x128xf32, #tpu.memory_space<vmem>>, %arg7: memref<1x128xf32, #tpu.memory_space<vmem>>, %arg8: memref<1x128xf32, #tpu.memory_space<vmem>>, %arg9: memref<64x128xf32, #tpu.memory_space<vmem>>, %arg10: memref<64x128xf32, #tpu.memory_space<vmem>>) attributes {dimension_semantics = [#tpu.dimension_semantics<arbitrary>], iteration_bounds = array<i64: 1>, scalar_prefetch = 0 : i64, scratch_operands = 0 : i64, tpu.core_type = #tpu.core_type<tc>, window_params = [{transform_indices = @transform_0, window_bounds = array<i64: 1, 1, 128>}, {transform_indices = @transform_1, window_bounds = array<i64: 1, 1, 128>}, {transform_indices = @transform_2, window_bounds = array<i64: 128, 4>}, {pipeline_mode = #tpu.pipeline_mode<synchronous>, transform_indices = @transform_3, window_bounds = array<i64: 64, 128>}, {pipeline_mode = #tpu.pipeline_mode<synchronous>, transform_indices = @transform_4, window_bounds = array<i64: 128, 512>}, {pipeline_mode = #tpu.pipeline_mode<synchronous>, transform_indices = @transform_5, window_bounds = array<i64: 1, 128>}, {pipeline_mode = #tpu.pipeline_mode<synchronous>, transform_indices = @transform_6, window_bounds = array<i64: 1, 128>}, {pipeline_mode = #tpu.pipeline_mode<synchronous>, transform_indices = @transform_7, window_bounds = array<i64: 1, 128>}, {pipeline_mode = #tpu.pipeline_mode<synchronous>, transform_indices = @transform_8, window_bounds = array<i64: 64, 128>}, {pipeline_mode = #tpu.pipeline_mode<synchronous>, transform_indices = @transform_9, window_bounds = array<i64: 64, 128>}]} {
    %c0_i32 = arith.constant 0 : i32
    %0 = arith.cmpi eq, %arg0, %c0_i32 : i32
    %1 = arith.extui %0 : i1 to i32
    %c0_i32_0 = arith.constant 0 : i32
    %2 = arith.cmpi ne, %1, %c0_i32_0 : i32
    scf.if %2 {
      %cst_20 = arith.constant 0.000000e+00 : f32
      %47 = vector.broadcast %cst_20 : f32 to vector<64x128xf32>
      %c0_21 = arith.constant 0 : index
      %c0_22 = arith.constant 0 : index
      %48 = vector.load %arg9[%c0_21, %c0_22] : memref<64x128xf32, #tpu.memory_space<vmem>>, vector<64x128xf32>
      tpu.vector_store %arg9[%c0_21, %c0_22], %47 {strides = array<i32>} : memref<64x128xf32, #tpu.memory_space<vmem>>, vector<64x128xf32>,
    } else {
    }
    %c0 = arith.constant 0 : index
    %c0_1 = arith.constant 0 : index
    %c0_2 = arith.constant 0 : index
    %3 = vector.load %arg1[%c0, %c0_1, %c0_2] : memref<1x1x128xi32, #tpu.memory_space<vmem>>, vector<1x1x128xi32>
    %4 = vector.shape_cast %3 : vector<1x1x128xi32> to vector<1x128xi32>
    %c0_3 = arith.constant 0 : index
    %c0_4 = arith.constant 0 : index
    %c0_5 = arith.constant 0 : index
    %5 = vector.load %arg2[%c0_3, %c0_4, %c0_5] : memref<1x1x128xi32, #tpu.memory_space<vmem>>, vector<1x1x128xi32>
    %6 = vector.shape_cast %5 : vector<1x1x128xi32> to vector<1x128xi32>
    %7 = tpu.iota {dimensions = array<i32: 0>} : vector<64x128xi32>
    %8 = vector.broadcast %4 : vector<1x128xi32> to vector<64x128xi32>
    %9 = arith.cmpi eq, %8, %7 : vector<64x128xi32>
    %10 = arith.extui %9 : vector<64x128xi1> to vector<64x128xi32>
    %11 = arith.sitofp %10 : vector<64x128xi32> to vector<64x128xf32>
    %c0_6 = arith.constant 0 : index
    %c0_7 = arith.constant 0 : index
    %12 = vector.load %arg4[%c0_6, %c0_7] : memref<64x128xf32, #tpu.memory_space<vmem>>, vector<64x128xf32>
    %cst = arith.constant dense<0.000000e+00> : vector<128x128xf32>
    %13 = tpu.matmul %11, %12, %cst {dimension_numbers = #tpu.dot_dimension_numbers<[0], [0], [1], [1], [0, 1, 1, 1], [], []>} : vector<64x128xf32>, vector<64x128xf32>, vector<128x128xf32> -> vector<128x128xf32>
    %c0_8 = arith.constant 0 : index
    %c0_9 = arith.constant 0 : index
    %14 = vector.load %arg5[%c0_8, %c0_9] : memref<128x512xf32, #tpu.memory_space<vmem>>, vector<128x512xf32>
    %cst_10 = arith.constant dense<0.000000e+00> : vector<128x512xf32>
    %15 = tpu.matmul %13, %14, %cst_10 {dimension_numbers = #tpu.dot_dimension_numbers<[1], [0], [0], [1], [0, 0, 1, 1], [], []>} : vector<128x128xf32>, vector<128x512xf32>, vector<128x512xf32> -> vector<128x512xf32>
    %c0_11 = arith.constant 0 : index
    %c0_12 = arith.constant 0 : index
    %16 = vector.load %arg3[%c0_11, %c0_12] : memref<128x4xf32, #tpu.memory_space<vmem>>, vector<128x4xf32>
    %17 = vector.extract_strided_slice %16 {offsets = [0, 0], sizes = [128, 1], strides = [1, 1]} : vector<128x4xf32> to vector<128x1xf32>
    %18 = vector.extract_strided_slice %15 {offsets = [0, 0], sizes = [128, 128], strides = [1, 1]} : vector<128x512xf32> to vector<128x128xf32>
    %19 = vector.broadcast %17 : vector<128x1xf32> to vector<128x128xf32>
    %20 = arith.mulf %19, %18 : vector<128x128xf32>
    %21 = vector.extract_strided_slice %16 {offsets = [0, 1], sizes = [128, 1], strides = [1, 1]} : vector<128x4xf32> to vector<128x1xf32>
    %22 = vector.extract_strided_slice %15 {offsets = [0, 128], sizes = [128, 128], strides = [1, 1]} : vector<128x512xf32> to vector<128x128xf32>
    %23 = vector.broadcast %21 : vector<128x1xf32> to vector<128x128xf32>
    %24 = arith.mulf %23, %22 : vector<128x128xf32>
    %25 = arith.addf %20, %24 : vector<128x128xf32>
    %26 = vector.extract_strided_slice %16 {offsets = [0, 2], sizes = [128, 1], strides = [1, 1]} : vector<128x4xf32> to vector<128x1xf32>
    %27 = vector.extract_strided_slice %15 {offsets = [0, 256], sizes = [128, 128], strides = [1, 1]} : vector<128x512xf32> to vector<128x128xf32>
    %28 = vector.broadcast %26 : vector<128x1xf32> to vector<128x128xf32>
    %29 = arith.mulf %28, %27 : vector<128x128xf32>
    %30 = arith.addf %25, %29 : vector<128x128xf32>
    %31 = vector.extract_strided_slice %16 {offsets = [0, 3], sizes = [128, 1], strides = [1, 1]} : vector<128x4xf32> to vector<128x1xf32>
    %32 = vector.extract_strided_slice %15 {offsets = [0, 384], sizes = [128, 128], strides = [1, 1]} : vector<128x512xf32> to vector<128x128xf32>
    %33 = vector.broadcast %31 : vector<128x1xf32> to vector<128x128xf32>
    %34 = arith.mulf %33, %32 : vector<128x128xf32>
    %35 = arith.addf %30, %34 : vector<128x128xf32>
    %36 = vector.broadcast %6 : vector<1x128xi32> to vector<64x128xi32>
    %37 = arith.cmpi eq, %36, %7 : vector<64x128xi32>
    %38 = arith.extui %37 : vector<64x128xi1> to vector<64x128xi32>
    %39 = arith.sitofp %38 : vector<64x128xi32> to vector<64x128xf32>
    %c0_13 = arith.constant 0 : index
    %c0_14 = arith.constant 0 : index
    %40 = vector.load %arg9[%c0_13, %c0_14] : memref<64x128xf32, #tpu.memory_space<vmem>>, vector<64x128xf32>
    %cst_15 = arith.constant dense<0.000000e+00> : vector<64x128xf32>
    %41 = tpu.matmul %39, %35, %cst_15 {dimension_numbers = #tpu.dot_dimension_numbers<[1], [0], [0], [1], [0, 0, 1, 1], [], []>} : vector<64x128xf32>, vector<128x128xf32>, vector<64x128xf32> -> vector<64x128xf32>
    %42 = arith.addf %40, %41 : vector<64x128xf32>
    %c0_16 = arith.constant 0 : index
    %c0_17 = arith.constant 0 : index
    %43 = vector.load %arg9[%c0_16, %c0_17] : memref<64x128xf32, #tpu.memory_space<vmem>>, vector<64x128xf32>
    tpu.vector_store %arg9[%c0_16, %c0_17], %42 {strides = array<i32>} : memref<64x128xf32, #tpu.memory_space<vmem>>, vector<64x128xf32>,
    %c0_i32_18 = arith.constant 0 : i32
    %44 = arith.cmpi eq, %arg0, %c0_i32_18 : i32
    %45 = arith.extui %44 : i1 to i32
    %c0_i32_19 = arith.constant 0 : i32
    %46 = arith.cmpi ne, %45, %c0_i32_19 : i32
    scf.if %46 {
      %c0_20 = arith.constant 0 : index
      %c0_21 = arith.constant 0 : index
      %47 = vector.load %arg9[%c0_20, %c0_21] : memref<64x128xf32, #tpu.memory_space<vmem>>, vector<64x128xf32>
      %cst_22 = arith.constant 0.000000e+00 : f32
      %48 = vector.broadcast %cst_22 : f32 to vector<64x128xf32>
      %49 = arith.maximumf %47, %48 : vector<64x128xf32>
      %cst_23 = arith.constant dense<0.000000e+00> : vector<128xf32>
      %50 = vector.multi_reduction <add>, %49, %cst_23 [0] : vector<64x128xf32> to vector<128xf32>
      %51 = vector.shape_cast %50 : vector<128xf32> to vector<1x128xf32>
      %cst_24 = arith.constant 1.562500e-02 : f32
      %52 = vector.broadcast %cst_24 : f32 to vector<1x128xf32>
      %53 = arith.mulf %51, %52 : vector<1x128xf32>
      %54 = vector.broadcast %53 : vector<1x128xf32> to vector<64x128xf32>
      %55 = arith.subf %49, %54 : vector<64x128xf32>
      %56 = arith.mulf %55, %55 : vector<64x128xf32>
      %cst_25 = arith.constant dense<0.000000e+00> : vector<128xf32>
      %57 = vector.multi_reduction <add>, %56, %cst_25 [0] : vector<64x128xf32> to vector<128xf32>
      %58 = vector.shape_cast %57 : vector<128xf32> to vector<1x128xf32>
      %cst_26 = arith.constant 0.000000e+00 : f32
      %59 = vector.broadcast %cst_26 : f32 to vector<1x128xf32>
      %60 = arith.mulf %59, %53 : vector<1x128xf32>
      %61 = arith.mulf %60, %53 : vector<1x128xf32>
      %62 = arith.subf %58, %61 : vector<1x128xf32>
      %cst_27 = arith.constant 1.562500e-02 : f32
      %63 = vector.broadcast %cst_27 : f32 to vector<1x128xf32>
      %64 = arith.mulf %62, %63 : vector<1x128xf32>
      %cst_28 = arith.constant 0.000000e+00 : f32
      %65 = vector.broadcast %cst_28 : f32 to vector<1x128xf32>
      %66 = arith.maximumf %64, %65 : vector<1x128xf32>
      %cst_29 = arith.constant 9.99999974E-6 : f32
      %67 = vector.broadcast %cst_29 : f32 to vector<1x128xf32>
      %68 = arith.addf %66, %67 : vector<1x128xf32>
      %69 = math.rsqrt %68 : vector<1x128xf32>
      %70 = vector.broadcast %69 : vector<1x128xf32> to vector<64x128xf32>
      %71 = arith.mulf %55, %70 : vector<64x128xf32>
      %c0_30 = arith.constant 0 : index
      %c0_31 = arith.constant 0 : index
      %72 = vector.load %arg6[%c0_30, %c0_31] : memref<1x128xf32, #tpu.memory_space<vmem>>, vector<1x128xf32>
      %73 = vector.broadcast %72 : vector<1x128xf32> to vector<64x128xf32>
      %74 = arith.mulf %71, %73 : vector<64x128xf32>
      %c0_32 = arith.constant 0 : index
      %c0_33 = arith.constant 0 : index
      %75 = vector.load %arg7[%c0_32, %c0_33] : memref<1x128xf32, #tpu.memory_space<vmem>>, vector<1x128xf32>
      %76 = vector.broadcast %75 : vector<1x128xf32> to vector<64x128xf32>
      %77 = arith.addf %74, %76 : vector<64x128xf32>
      %c0_34 = arith.constant 0 : index
      %c0_35 = arith.constant 0 : index
      %78 = vector.load %arg9[%c0_34, %c0_35] : memref<64x128xf32, #tpu.memory_space<vmem>>, vector<64x128xf32>
      tpu.vector_store %arg9[%c0_34, %c0_35], %77 {strides = array<i32>} : memref<64x128xf32, #tpu.memory_space<vmem>>, vector<64x128xf32>,
      %c0_36 = arith.constant 0 : index
      %c0_37 = arith.constant 0 : index
      %79 = vector.load %arg8[%c0_36, %c0_37] : memref<1x128xf32, #tpu.memory_space<vmem>>, vector<1x128xf32>
      %80 = vector.broadcast %79 : vector<1x128xf32> to vector<64x128xf32>
      %81 = arith.mulf %77, %80 : vector<64x128xf32>
      %cst_38 = arith.constant dense<0.000000e+00> : vector<64xf32>
      %82 = vector.multi_reduction <add>, %81, %cst_38 [1] : vector<64x128xf32> to vector<64xf32>
      %83 = vector.shape_cast %82 : vector<64xf32> to vector<64x1xf32>
      %84 = vector.shape_cast %83 : vector<64x1xf32> to vector<64x1xf32>
      %85 = vector.broadcast %84 : vector<64x1xf32> to vector<64x128xf32>
      %c0_39 = arith.constant 0 : index
      %c0_40 = arith.constant 0 : index
      %86 = vector.load %arg10[%c0_39, %c0_40] : memref<64x128xf32, #tpu.memory_space<vmem>>, vector<64x128xf32>
      tpu.vector_store %arg10[%c0_39, %c0_40], %85 {strides = array<i32>} : memref<64x128xf32, #tpu.memory_space<vmem>>, vector<64x128xf32>,
    } else {
    }
    return
  }
  func.func @transform_0(%arg0: i32) -> (i32, i32, i32) {
    %c0_i32 = arith.constant 0 : i32
    %c0_i32_0 = arith.constant 0 : i32
    %c0_i32_1 = arith.constant 0 : i32
    return %arg0, %c0_i32, %c0_i32_0 : i32, i32, i32
  }
  func.func @transform_1(%arg0: i32) -> (i32, i32, i32) {
    %c0_i32 = arith.constant 0 : i32
    %c0_i32_0 = arith.constant 0 : i32
    %c0_i32_1 = arith.constant 0 : i32
    return %arg0, %c0_i32, %c0_i32_0 : i32, i32, i32
  }
  func.func @transform_2(%arg0: i32) -> (i32, i32) {
    %c0_i32 = arith.constant 0 : i32
    %c0_i32_0 = arith.constant 0 : i32
    return %arg0, %c0_i32 : i32, i32
  }
  func.func @transform_3(%arg0: i32) -> (i32, i32) {
    %c0_i32 = arith.constant 0 : i32
    %c0_i32_0 = arith.constant 0 : i32
    %c0_i32_1 = arith.constant 0 : i32
    return %c0_i32, %c0_i32_0 : i32, i32
  }
  func.func @transform_4(%arg0: i32) -> (i32, i32) {
    %c0_i32 = arith.constant 0 : i32
    %c0_i32_0 = arith.constant 0 : i32
    %c0_i32_1 = arith.constant 0 : i32
    return %c0_i32, %c0_i32_0 : i32, i32
  }
  func.func @transform_5(%arg0: i32) -> (i32, i32) {
    %c0_i32 = arith.constant 0 : i32
    %c0_i32_0 = arith.constant 0 : i32
    %c0_i32_1 = arith.constant 0 : i32
    return %c0_i32, %c0_i32_0 : i32, i32
  }
  func.func @transform_6(%arg0: i32) -> (i32, i32) {
    %c0_i32 = arith.constant 0 : i32
    %c0_i32_0 = arith.constant 0 : i32
    %c0_i32_1 = arith.constant 0 : i32
    return %c0_i32, %c0_i32_0 : i32, i32
  }
  func.func @transform_7(%arg0: i32) -> (i32, i32) {
    %c0_i32 = arith.constant 0 : i32
    %c0_i32_0 = arith.constant 0 : i32
    %c0_i32_1 = arith.constant 0 : i32
    return %c0_i32, %c0_i32_0 : i32, i32
  }
  func.func @transform_8(%arg0: i32) -> (i32, i32) {
    %c0_i32 = arith.constant 0 : i32
    %c0_i32_0 = arith.constant 0 : i32
    %c0_i32_1 = arith.constant 0 : i32
    return %c0_i32, %c0_i32_0 : i32, i32
  }
  func.func @transform_9(%arg0: i32) -> (i32, i32) {
    %c0_i32 = arith.constant 0 : i32
    %c0_i32_0 = arith.constant 0 : i32
    %c0_i32_1 = arith.constant 0 : i32
    return %c0_i32, %c0_i32_0 : i32, i32
  }
}

</mosaic_0001>

<bundles_post_ra>
// kernel: tpu_custom_call.1
= control target key start
LH: loop header
LB: loop body
LE: loop exit
PB: predicated region body
PF: predicated region fallthrough
CT: control target
= control target key end

     0   :  { %15 = vsyncpa [#allocation3], 0  ;;  %s2426_s0 = inlined_call_operand.vmem [shape: s32[1,1,128], index: 0, kind: input, shape index: {}]   ;;  %s2427_s1 = inlined_call_operand.vmem [shape: s32[1,1,128], index: 1, kind: input, shape index: {}]   ;;  %s2428_s2 = inlined_call_operand.vmem [shape: f32[128,4], index: 2, kind: input, shape index: {}]   ;;  %s2429_s3 = inlined_call_operand.vmem [shape: f32[64,128], index: 3, kind: input, shape index: {}]   ;;  %s2430_s4 = inlined_call_operand.hbm [shape: f32[128,512], index: 4, kind: input, shape index: {}]   ;;  %s2431_s5 = inlined_call_operand.vmem [shape: f32[1,128], index: 5, kind: input, shape index: {}]   ;;  %s2432_s6 = inlined_call_operand.vmem [shape: f32[1,128], index: 6, kind: input, shape index: {}]   ;;  %s2433_s7 = inlined_call_operand.vmem [shape: f32[1,128], index: 7, kind: input, shape index: {}]   ;;  %s2434_s8 = inlined_call_operand.hbm [shape: f32[64,128], index: 8, kind: output, shape index: {0}]   ;;  %s2435_s9 = inlined_call_operand.hbm [shape: f32[64,128], index: 9, kind: output, shape index: {1}]  }
   0x1   :  { %16 = vsyncpa [#allocation4], 0 }
   0x2   :  { %17 = vsyncpa [#allocation7], 0  ;;  %s1876_s30 = smov [#allocation2]   ;;  %s1804_s13 = scalar_lea.hbm %s2430_s4, 8192 }
   0x3   :  { %s31_s10 = sshll.u32 %s1876_s30, 4  ;;  %p1805_p0 = scmp.ne.s32.totalorder %s2430_s4, %s1804_s13  ;;  %s32_s10 = int_to_ptr.vmem [resolvable:$true] %s31_s10 }
   0x4   :  { %p1808_p1 = scmp.lt.u32.totalorder %s1804_s13, %s2430_s4 }
   0x6   :  { %p1810_p2 = pnand %p1808_p1, %p1805_p0 }
   0x8   :  { %1813 = shalt.err (!%p1810_p2)
}
   0x9   :  { %s1814_s18 = scalar_lea.vmem %s32_s10, 8192  ;;  %p1819_p4 = scmp.lt.s32.totalorder %s32_s10, %s32_s10 }
   0xa   :  { %p1815_p3 = scmp.ne.s32.totalorder %s32_s10, %s1814_s18  ;;  %p1820_p5 = scmp.lt.s32.totalorder %s1814_s18, %s1814_s18 }
   0xc   :  { %p1821_p6 = por %p1820_p5, %p1819_p4 }
   0xe   :  { %p1822_p7 = pnand %p1821_p6, %p1815_p3 }
  0x10   :  { %1825 = shalt.err (!%p1822_p7)
}
  0x11   :  { %s1877_s19 = smov 512   ;;  %s1878_s20 = smov 32  }
  0x12   :  { %37 = dma.hbm_to_vmem [thread:$0]  %s2430_s4, 8192, %s32_s10, [#allocation3], %s1877_s19, %s1877_s19, %s1878_s20  }
  0x13   :  { %1870 = dma.done.wait [#allocation3], 8192  }
  0x14   :  { %1871 = vsyncadd [#allocation3], 4294959104  ;;  %v61_v0 = vlaneseq  ;;  %v1879_v1 = vmov 0.0   ;;  %v1462_v4 = vld [vmem:[%s2426_s0] ss:$0 sm:$0xff]  ;;  %v99_v8 = vld [vmem:[%s2429_s3 + $0x8] sm:$0xff] }
  0x15   :  { %460 = vmatprep.mubr.f32.mxu1 %v1879_v1  ;;  %v98_v6 = vld [vmem:[%s2429_s3] sm:$0xff]  ;;  %v100_v9 = vld [vmem:[%s2429_s3 + $0x10] sm:$0xff]  ;;  %v101_v10 = vld [vmem:[%s2429_s3 + $0x18] sm:$0xff]  ;;  %v1880_v32 = vmov 0   ;;  %v1881_v53 = vmov 2   ;;  %v1882_v55 = vmov 1  }
  0x16   :  { %v1952_v2 = vshrl.u32 %v61_v0, 7  ;;  %v1639_v13 = vpack.c.bf16 %v99_v8, %v98_v6  ;;  %v1643_v14 = vpack.c.bf16 %v101_v10, %v100_v9  ;;  %v102_v15 = vld [vmem:[%s2429_s3 + $0x20] sm:$0xff]  ;;  %v103_v16 = vld [vmem:[%s2429_s3 + $0x28] sm:$0xff]  ;;  %v104_v20 = vld [vmem:[%s2429_s3 + $0x30] sm:$0xff]  ;;  %1764 = vset.pattern.permute.xlu1 %v1880_v32  ;;  %vm138_vm8 = vcmask 523264  }
  0x17   :  { %v1647_v19 = vpack.c.bf16 %v103_v16, %v102_v15  ;;  %v105_v21 = vld [vmem:[%s2429_s3 + $0x38] sm:$0xff]  ;;  %v2021_v31 = vld [vmem:[%s2428_s2] sm:$0xff]  ;;  %v333_v33 = vld [vmem:[#allocation2 + $0x8] sm:$0xff] }
  0x18   :  { %v1955_v3 = vadd.s32 8, %v1952_v2  ;;  %vm74_vm0 = vcmp.eq.s32.totalorder %v1462_v4, %v1952_v2  ;;  %v1963_v5 = vadd.s32 16, %v1952_v2  ;;  %v1981_v12 = vadd.s32 24, %v1952_v2  ;;  %1640 = vmatprep.subr.bf16.mxu0 %v1639_v13  ;;  %v337_v34 = vld [vmem:[#allocation2 + $0x28] sm:$0xff]  ;;  %736 = vperm.xlu1 %1764, %v2021_v31   ;;  %v335_v36 = vld [vmem:[#allocation2 + $0x18] sm:$0xff]  ;;  %v332_v38 = vld [vmem:[#allocation2] sm:$0xff] }
  0x19   :  { %v1463_v7 = vsel %vm74_vm0, 1.0, %v1879_v1  ;;  %1642 = vmatpush3.bf16.msra.mxu0 %v1639_v13  ;;  %v1992_v18 = vadd.s32 32, %v1952_v2  ;;  %v2003_v23 = vadd.s32 40, %v1952_v2  ;;  %v1651_v24 = vpack.c.bf16 %v105_v21, %v104_v20  ;;  %v339_v37 = vld [vmem:[#allocation2 + $0x38] sm:$0xff]  ;;  %v2028_v39 = vld [vmem:[%s2428_s2 + $0x8] sm:$0xff]  ;;  %v336_v41 = vld [vmem:[#allocation2 + $0x20] sm:$0xff] }
  0x1a   :  { %2447 = vst [vmem:[#allocation11_spill] sm:$0xff] %v1955_v3  ;;  %vm75_vm1 = vcmp.eq.s32.totalorder %v1462_v4, %v1955_v3  ;;  %2448 = vst [vmem:[#allocation12_spill] sm:$0xff] %v1963_v5  ;;  %106 = vxpose.xlu0.b32.start [1/8] (short) %v1463_v7, 128  ;;  %vm76_vm2 = vcmp.eq.s32.totalorder %v1462_v4, %v1963_v5  ;;  %vm77_vm3 = vcmp.eq.s32.totalorder %v1462_v4, %v1981_v12  ;;  %v341_v43 = vld [vmem:[#allocation2 + $0x48] sm:$0xff]  ;;  %v340_v46 = vld [vmem:[#allocation2 + $0x40] sm:$0xff] }
  0x1b   :  { %v1464_v11 = vsel %vm75_vm1, 1.0, %v1879_v1  ;;  %2449 = vst [vmem:[#allocation13_spill] sm:$0xff] %v1981_v12  ;;  %v1465_v17 = vsel %vm76_vm2, 1.0, %v1879_v1  ;;  %2450 = vst [vmem:[#allocation14_spill] sm:$0xff] %v1992_v18  ;;  %1644 = vmatprep.subr.bf16.mxu0 %v1643_v14  ;;  %v1466_v22 = vsel %vm77_vm3, 1.0, %v1879_v1  ;;  %vm78_vm4 = vcmp.eq.s32.totalorder %v1462_v4, %v1992_v18  ;;  %v345_v44 = vld [vmem:[#allocation2 + $0x68] sm:$0xff] }
  0x1c   :  { %2451 = vst [vmem:[#allocation15_spill] sm:$0xff] %v2003_v23  ;;  %v1467_v25 = vsel %vm78_vm4, 1.0, %v1879_v1  ;;  %vm79_vm5 = vcmp.eq.s32.totalorder %v1462_v4, %v2003_v23  ;;  %v2008_v26 = vadd.s32 48, %v1952_v2  ;;  %v2013_v28 = vadd.s32 56, %v1952_v2  ;;  %741 = vperm.xlu1 %1764, %v2028_v39   ;;  %v344_v47 = vld [vmem:[#allocation2 + $0x60] sm:$0xff]  ;;  %v349_v49 = vld [vmem:[#allocation2 + $0x88] sm:$0xff] }
  0x1d   :  { %1646 = vmatpush3.bf16.msra.mxu0 %v1643_v14  ;;  %v1468_v27 = vsel %vm79_vm5, 1.0, %v1879_v1  ;;  %v1655_v35 = vpack.c.bf16 %v337_v34, %v333_v33  ;;  %v1687_v40 = vpack.c.bf16 %v339_v37, %v335_v36  ;;  %v1657_v42 = vpack.c.bf16 %v336_v41, %v332_v38  ;;  %v353_v50 = vld [vmem:[#allocation2 + $0xa8] sm:$0xff]  ;;  %v348_v52 = vld [vmem:[#allocation2 + $0x80] sm:$0xff]  ;;  %v2048_v34 = vld [vmem:[%s2428_s2 + $0x18] sm:$0xff] }
  0x1e   :  { %107 = vxpose.xlu0.b32.cont [2/8] (short) %v1464_v11, 128  ;;  %1648 = vmatprep.subr.bf16.mxu0 %v1647_v19  ;;  %2452 = vst [vmem:[#allocation16_spill] sm:$0xff] %v2008_v26  ;;  %vm80_vm6 = vcmp.eq.s32.totalorder %v1462_v4, %v2008_v26  ;;  %2453 = vst [vmem:[#allocation17_spill] sm:$0xff] %v2013_v28  ;;  %vm81_vm7 = vcmp.eq.s32.totalorder %v1462_v4, %v2013_v28  ;;  %v352_v54 = vld [vmem:[#allocation2 + $0xa0] sm:$0xff]  ;;  %v357_v57 = vld [vmem:[#allocation2 + $0xc8] sm:$0xff]  ;;  %v1883_v36 = vmov 3  }
  0x1f   :  { %v1469_v29 = vsel %vm80_vm6, 1.0, %v1879_v1  ;;  %v1470_v30 = vsel %vm81_vm7, 1.0, %v1879_v1  ;;  %1656 = vmatprep.subr.bf16.mxu1 %v1655_v35  ;;  %v1659_v45 = vpack.c.bf16 %v345_v44, %v341_v43  ;;  %v1661_v48 = vpack.c.bf16 %v344_v47, %v340_v46  ;;  %v361_v58 = vld [vmem:[#allocation2 + $0xe8] sm:$0xff]  ;;  %v356_v60 = vld [vmem:[#allocation2 + $0xc0] sm:$0xff]  ;;  %v334_v38 = vld [vmem:[#allocation2 + $0x10] sm:$0xff] }
  0x20   :  { %1658 = vmatpush1.bf16.msra.mxu1 %v1657_v42  ;;  %v1663_v51 = vpack.c.bf16 %v353_v50, %v349_v49  ;;  %1765 = vset.pattern.permute.xlu1 %v1882_v55  ;;  %v1665_v56 = vpack.c.bf16 %v352_v54, %v348_v52  ;;  %v1667_v59 = vpack.c.bf16 %v361_v58, %v357_v57  ;;  %v360_v61 = vld [vmem:[#allocation2 + $0xe0] sm:$0xff]  ;;  %v365_v62 = vld [vmem:[#allocation2 + $0x108] sm:$0xff]  ;;  %v343_v41 = vld [vmem:[#allocation2 + $0x58] sm:$0xff] }
  0x21   :  { %1650 = vmatpush3.bf16.msra.mxu0 %v1647_v19  ;;  %1660 = vmatprep.subr.bf16.mxu1 %v1659_v45  ;;  %v369_v63 = vld [vmem:[#allocation2 + $0x128] sm:$0xff]  ;;  %v1669_v0 = vpack.c.bf16 %v360_v61, %v356_v60  ;;  %v364_v6 = vld [vmem:[#allocation2 + $0x100] sm:$0xff]  ;;  %v347_v42 = vld [vmem:[#allocation2 + $0x78] sm:$0xff] }
  0x22   :  { %108 = vxpose.xlu0.b32.cont [3/8] (short) %v1465_v17, 128  ;;  %1652 = vmatprep.subr.bf16.mxu0 %v1651_v24  ;;  %v1671_v4 = vpack.c.bf16 %v369_v63, %v365_v62  ;;  %v368_v7 = vld [vmem:[#allocation2 + $0x120] sm:$0xff]  ;;  %v373_v8 = vld [vmem:[#allocation2 + $0x148] sm:$0xff]  ;;  %v1691_v44 = vpack.c.bf16 %v347_v42, %v343_v41  ;;  %v342_v45 = vld [vmem:[#allocation2 + $0x50] sm:$0xff] }
  0x23   :  { %831 = vperm.xlu1 %1765, %v2021_v31   ;;  %v377_v9 = vld [vmem:[#allocation2 + $0x168] sm:$0xff]  ;;  %v1673_v10 = vpack.c.bf16 %v368_v7, %v364_v6  ;;  %v372_v13 = vld [vmem:[#allocation2 + $0x140] sm:$0xff]  ;;  %v346_v46 = vld [vmem:[#allocation2 + $0x70] sm:$0xff] }
  0x24   :  { %1662 = vmatpush1.bf16.msra.mxu1 %v1661_v48  ;;  %v1675_v11 = vpack.c.bf16 %v377_v9, %v373_v8  ;;  %v376_v14 = vld [vmem:[#allocation2 + $0x160] sm:$0xff]  ;;  %v381_v15 = vld [vmem:[#allocation2 + $0x188] sm:$0xff]  ;;  %v351_v48 = vld [vmem:[#allocation2 + $0x98] sm:$0xff]  ;;  %v1693_v50 = vpack.c.bf16 %v346_v46, %v342_v45 }
  0x25   :  { %1654 = vmatpush3.bf16.msra.mxu0 %v1651_v24  ;;  %1664 = vmatprep.subr.bf16.mxu1 %v1663_v51  ;;  %v385_v16 = vld [vmem:[#allocation2 + $0x1a8] sm:$0xff]  ;;  %v1677_v17 = vpack.c.bf16 %v376_v14, %v372_v13  ;;  %v380_v20 = vld [vmem:[#allocation2 + $0x180] sm:$0xff]  ;;  %v355_v49 = vld [vmem:[#allocation2 + $0xb8] sm:$0xff] }
  0x26   :  { %109 = vxpose.xlu0.b32.cont [4/8] (short) %v1466_v22, 128  ;;  %1688 = vmatprep.subr.bf16.mxu0 %v1687_v40  ;;  %v1679_v19 = vpack.c.bf16 %v385_v16, %v381_v15  ;;  %v384_v21 = vld [vmem:[#allocation2 + $0x1a0] sm:$0xff]  ;;  %v389_v22 = vld [vmem:[#allocation2 + $0x1c8] sm:$0xff]  ;;  %v1695_v51 = vpack.c.bf16 %v355_v49, %v351_v48  ;;  %v350_v52 = vld [vmem:[#allocation2 + $0x90] sm:$0xff] }
  0x27   :  { %835 = vperm.xlu1 %1765, %v2028_v39   ;;  %v393_v24 = vld [vmem:[#allocation2 + $0x1e8] sm:$0xff]  ;;  %v392_v33 = vld [vmem:[#allocation2 + $0x1e0] sm:$0xff]  ;;  %v354_v54 = vld [vmem:[#allocation2 + $0xb0] sm:$0xff] }
  0x28   :  { %1666 = vmatpush1.bf16.msra.mxu1 %v1665_v56  ;;  %v2062_v37 = vld [vmem:[%s2428_s2 + $0x20] sm:$0xff]  ;;  %v359_v57 = vld [vmem:[#allocation2 + $0xd8] sm:$0xff]  ;;  %v358_v61 = vld [vmem:[#allocation2 + $0xd0] sm:$0xff] }
  0x29   :  { %1668 = vmatprep.subr.bf16.mxu1 %v1667_v59  ;;  %v363_v58 = vld [vmem:[#allocation2 + $0xf8] sm:$0xff]  ;;  %v1697_v59 = vpack.c.bf16 %v354_v54, %v350_v52  ;;  %v362_v62 = vld [vmem:[#allocation2 + $0xf0] sm:$0xff]  ;;  %v726_v54 = vld [vmem:[%s2428_s2 + $0x40] sm:$0xff] }
  0x2a   :  { %110 = vxpose.xlu0.b32.cont [5/8] (short) %v1467_v25, 128  ;;  %v2041_v25 = vld [vmem:[%s2428_s2 + $0x10] sm:$0xff]  ;;  %v1699_v60 = vpack.c.bf16 %v363_v58, %v359_v57  ;;  %v1701_v6 = vpack.c.bf16 %v362_v62, %v358_v61  ;;  %v379_v13 = vld [vmem:[#allocation2 + $0x178] sm:$0xff]  ;;  %v730_v57 = vld [vmem:[%s2428_s2 + $0x60] sm:$0xff] }
  0x2b   :  { %1766 = vset.pattern.permute.xlu1 %v1881_v53  ;;  %v366_v8 = vld [vmem:[#allocation2 + $0x110] sm:$0xff]  ;;  %v725_v52 = vld [vmem:[%s2428_s2 + $0x38] sm:$0xff] }
  0x2c   :  { %1670 = vmatpush1.bf16.msra.mxu1 %v1669_v0  ;;  %927 = vperm.xlu1 %1766, %v2021_v31   ;;  %v367_v0 = vld [vmem:[#allocation2 + $0x118] sm:$0xff]  ;;  %v370_v9 = vld [vmem:[#allocation2 + $0x130] sm:$0xff] }
  0x2d   :  { %1672 = vmatprep.subr.bf16.mxu1 %v1671_v4  ;;  %v371_v4 = vld [vmem:[#allocation2 + $0x138] sm:$0xff]  ;;  %v1705_v14 = vpack.c.bf16 %v370_v9, %v366_v8  ;;  %v374_v16 = vld [vmem:[#allocation2 + $0x150] sm:$0xff] }
  0x2e   :  { %111 = vxpose.xlu0.b32.cont [6/8] (short) %v1468_v27, 128  ;;  %v1681_v27 = vpack.c.bf16 %v384_v21, %v380_v20  ;;  %v1703_v7 = vpack.c.bf16 %v371_v4, %v367_v0  ;;  %v383_v20 = vld [vmem:[#allocation2 + $0x198] sm:$0xff]  ;;  %v732_v62 = vld [vmem:[%s2428_s2 + $0x70] sm:$0xff] }
  0x2f   :  { %v387_v21 = vld [vmem:[#allocation2 + $0x1b8] sm:$0xff] }
  0x30   :  { %1674 = vmatpush1.bf16.msra.mxu1 %v1673_v10  ;;  %931 = vperm.xlu1 %1766, %v2028_v39   ;;  %v2140_v58 = vld [vmem:[%s2428_s2 + $0x78] sm:$0xff] }
  0x31   :  { %1676 = vmatprep.subr.bf16.mxu1 %v1675_v11  ;;  %v375_v11 = vld [vmem:[#allocation2 + $0x158] sm:$0xff] }
  0x32   :  { %112 = vxpose.xlu0.b32.cont [7/8] (short) %v1469_v29, 128  ;;  %v1683_v29 = vpack.c.bf16 %v393_v24, %v389_v22  ;;  %v1707_v15 = vpack.c.bf16 %v379_v13, %v375_v11  ;;  %v1711_v24 = vpack.c.bf16 %v387_v21, %v383_v20 }
  0x34   :  { %1678 = vmatpush1.bf16.msra.mxu1 %v1677_v17  ;;  %1767 = vset.pattern.permute.xlu1 %v1880_v32  ;;  %v378_v17 = vld [vmem:[#allocation2 + $0x170] sm:$0xff] }
  0x35   :  { %1680 = vmatprep.subr.bf16.mxu1 %v1679_v19  ;;  %746 = vperm.xlu1 %1767, %v2041_v25   ;;  %v1709_v22 = vpack.c.bf16 %v378_v17, %v374_v16 }
  0x36   :  { %113 = vxpose.xlu0.b32.end [8/8] (short) %v1470_v30, 128  ;;  %v388_v30 = vld [vmem:[#allocation2 + $0x1c0] sm:$0xff] }
  0x37   :  { %v1685_v35 = vpack.c.bf16 %v392_v33, %v388_v30  ;;  %v391_v33 = vld [vmem:[#allocation2 + $0x1d8] sm:$0xff] }
  0x38   :  { %1682 = vmatpush1.bf16.msra.mxu1 %v1681_v27  ;;  %v382_v27 = vld [vmem:[#allocation2 + $0x190] sm:$0xff] }
  0x39   :  { %1684 = vmatprep.subr.bf16.mxu1 %v1683_v29  ;;  %751 = vperm.xlu1 %1767, %v2048_v34   ;;  %v386_v29 = vld [vmem:[#allocation2 + $0x1b0] sm:$0xff] }
  0x3c   :  { %1686 = vmatpush1.bf16.msra.mxu1 %v1685_v35  ;;  %v1713_v35 = vpack.c.bf16 %v386_v29, %v382_v27 }
  0x3d   :  { %1768 = vset.pattern.permute.xlu1 %v1882_v55 }
  0x3e   :  { %843 = vperm.xlu1 %1768, %v2048_v34  }
  0x42   :  { %1769 = vset.pattern.permute.xlu1 %v1883_v36 }
  0x43   :  { %1023 = vperm.xlu1 %1769, %v2021_v31   ;;  %v2069_v31 = vld [vmem:[%s2428_s2 + $0x28] sm:$0xff] }
  0x47   :  { %1027 = vperm.xlu1 %1769, %v2028_v39   ;;  %v338_v39 = vld [vmem:[#allocation2 + $0x30] sm:$0xff] }
  0x48   :  { %v1689_v43 = vpack.c.bf16 %v338_v39, %v334_v38  ;;  %v390_v39 = vld [vmem:[#allocation2 + $0x1d0] sm:$0xff] }
  0x4b   :  { %1770 = vset.pattern.permute.xlu1 %v1881_v53 }
  0x4c   :  { %935 = vperm.xlu1 %1770, %v2041_v25  }
  0x50   :  { %939 = vperm.xlu1 %1770, %v2048_v34  }
  0x54   :  { %1771 = vset.pattern.permute.xlu1 %v1880_v32 }
  0x55   :  { %756 = vperm.xlu1 %1771, %v2062_v37  }
  0x59   :  { %761 = vperm.xlu1 %1771, %v2069_v31  }
  0x5d   :  { %1772 = vset.pattern.permute.xlu1 %v1882_v55 }
  0x5e   :  { %847 = vperm.xlu1 %1772, %v2062_v37  }
  0x5f   :  { %1778 = vset.pattern.permute.xlu0 %v1881_v53 }
  0x62   :  { %851 = vperm.xlu1 %1772, %v2069_v31  }
  0x66   :  { %1773 = vset.pattern.permute.xlu1 %v1883_v36 }
  0x67   :  { %1031 = vperm.xlu1 %1773, %v2041_v25  }
  0x6b   :  { %1035 = vperm.xlu1 %1773, %v2048_v34   ;;  %v395_v34 = vld [vmem:[#allocation2 + $0x1f8] sm:$0xff] }
  0x6c   :  { %v1715_v38 = vpack.c.bf16 %v395_v34, %v391_v33 }
  0x6f   :  { %1774 = vset.pattern.permute.xlu1 %v1881_v53 }
  0x70   :  { %943 = vperm.xlu1 %1774, %v2062_v37  }
  0x74   :  { %947 = vperm.xlu1 %1774, %v2069_v31  }
  0x78   :  { %1775 = vset.pattern.permute.xlu1 %v1880_v32 }
  0x9a   :  { %v122_v40 = vpop.trf.xlu0 }
  0x9b   :  { %1571 = vmatprep.mubr.msk.f32.mxu0 %vm138_vm8, %v122_v40  ;;  %v394_v40 = vld [vmem:[#allocation2 + $0x1f0] sm:$0xff] }
  0x9c   :  { %v1717_v42 = vpack.c.bf16 %v394_v40, %v390_v39 }
  0x9e   :  { %v123_v47 = vpop.trf.xlu0 }
  0x9f   :  { %1572 = vmatmul.mubr.msk.f32.vlgmr.msra.gmra.mrb[0].mxu0 %vm138_vm8, %v123_v47 }
  0xa0   :  { %1690 = vmatpush1.bf16.msra.mxu0 %v1689_v43 }
  0xa1   :  { %1692 = vmatprep.subr.bf16.mxu0 %v1691_v44 }
  0xa2   :  { %v124_v56 = vpop.trf.xlu0 }
  0xa3   :  { %1574 = vmatprep.mubr.msk.f32.mxu0 %vm138_vm8, %v124_v56  ;;  %v727_v56 = vld [vmem:[%s2428_s2 + $0x48] sm:$0xff] }
  0xa4   :  { %1694 = vmatpush1.bf16.msra.mxu0 %v1693_v50 }
  0xa5   :  { %1696 = vmatprep.subr.bf16.mxu0 %v1695_v51  ;;  %v724_v51 = vld [vmem:[%s2428_s2 + $0x30] sm:$0xff] }
  0xa6   :  { %v125_v63 = vpop.trf.xlu0  ;;  %766 = vperm.xlu1 %1775, %v724_v51   ;;  %951 = vperm.xlu0 %1778, %v724_v51  }
  0xa7   :  { %1575 = vmatmul.mubr.msk.f32.gmra.mrb[2].mxu0 %vm138_vm8, %v125_v63 }
  0xa8   :  { %1698 = vmatpush1.bf16.msra.mxu0 %v1697_v59  ;;  %v2150_v59 = vpop.permute.xlu1 %736 }
  0xa9   :  { %1700 = vmatprep.subr.bf16.mxu0 %v1699_v60 }
  0xaa   :  { %v126_v10 = vpop.trf.xlu0  ;;  %771 = vperm.xlu1 %1775, %v725_v52   ;;  %963 = vperm.xlu0 %1778, %v727_v56  }
  0xab   :  { %1577 = vmatprep.mubr.msk.f32.mxu0 %vm138_vm8, %v126_v10 }
  0xac   :  { %1702 = vmatpush1.bf16.msra.mxu0 %v1701_v6  ;;  %v2154_v60 = vpop.permute.xlu1 %741 }
  0xad   :  { %1704 = vmatprep.subr.bf16.mxu0 %v1703_v7 }
  0xae   :  { %v127_v19 = vpop.trf.xlu0  ;;  %1776 = vset.pattern.permute.xlu1 %v1882_v55  ;;  %1784 = vset.pattern.permute.xlu0 %v1882_v55 }
  0xaf   :  { %1578 = vmatmul.mubr.msk.f32.gmra.mrb[4].mxu0 %vm138_vm8, %v127_v19  ;;  %855 = vperm.xlu1 %1776, %v724_v51  }
  0xb0   :  { %1706 = vmatpush1.bf16.msra.mxu0 %v1705_v14  ;;  %839 = vperm.xlu0 %1784, %v2041_v25   ;;  %v729_v25 = vld [vmem:[%s2428_s2 + $0x58] sm:$0xff]  ;;  %v2157_v61 = vpop.permute.xlu1 %831 }
  0xb1   :  { %1708 = vmatprep.subr.bf16.mxu0 %v1707_v15 }
  0xb2   :  { %v128_v30 = vpop.trf.xlu0 }
  0xb3   :  { %1580 = vmatprep.mubr.msk.f32.mxu0 %vm138_vm8, %v128_v30  ;;  %859 = vperm.xlu1 %1776, %v725_v52  }
  0xb4   :  { %1710 = vmatpush1.bf16.msra.mxu0 %v1709_v22  ;;  %v2163_v63 = vpop.permute.xlu1 %835 }
  0xb5   :  { %1712 = vmatprep.subr.bf16.mxu0 %v1711_v24 }
  0xb6   :  { %v129_v41 = vpop.trf.xlu0 }
  0xb7   :  { %1581 = vmatmul.mubr.msk.f32.gmra.mrb[6].mxu0 %vm138_vm8, %v129_v41  ;;  %1777 = vset.pattern.permute.xlu1 %v1883_v36 }
  0xb8   :  { %1714 = vmatpush1.bf16.msra.mxu0 %v1713_v35  ;;  %1039 = vperm.xlu1 %1777, %v2062_v37   ;;  %v728_v37 = vld [vmem:[%s2428_s2 + $0x50] sm:$0xff]  ;;  %v2166_v4 = vpop.permute.xlu1 %927 }
  0xb9   :  { %1716 = vmatprep.subr.bf16.mxu0 %v1715_v38  ;;  %871 = vperm.xlu0 %1784, %v728_v37  }
  0xba   :  { %v130_v43 = vpop.trf.xlu0 }
  0xbb   :  { %1583 = vmatprep.mubr.msk.f32.mxu0 %vm138_vm8, %v130_v43 }
  0xbc   :  { %1718 = vmatpush1.bf16.msra.mxu0 %v1717_v42  ;;  %1043 = vperm.xlu1 %1777, %v2069_v31   ;;  %v731_v31 = vld [vmem:[%s2428_s2 + $0x68] sm:$0xff] }
  0xbd   :  { %883 = vperm.xlu0 %1784, %v731_v31  }
  0xbe   :  { %v131_v44 = vpop.trf.xlu0 }
  0xbf   :  { %1584 = vmatmul.mubr.msk.f32.gmra.mrb[8].mxu0 %vm138_vm8, %v131_v44 }
  0xc0   :  { %1779 = vset.pattern.permute.xlu1 %v1881_v53 }
  0xc1   :  { %955 = vperm.xlu1 %1779, %v725_v52   ;;  %1791 = vset.pattern.permute.xlu0 %v1880_v32 }
  0xc2   :  { %v132_v45 = vpop.trf.xlu0  ;;  %781 = vperm.xlu0 %1791, %v727_v56  }
  0xc3   :  { %1586 = vmatprep.mubr.msk.f32.mxu0 %vm138_vm8, %v132_v45 }
  0xc5   :  { %1780 = vset.pattern.permute.xlu1 %v1880_v32 }
  0xc6   :  { %v133_v46 = vpop.trf.xlu0  ;;  %776 = vperm.xlu1 %1780, %v726_v54   ;;  %796 = vperm.xlu0 %1791, %v730_v57  }
  0xc7   :  { %1587 = vmatmul.mubr.msk.f32.gmra.mrb[10].mxu0 %vm138_vm8, %v133_v46 }
  0xca   :  { %v134_v47 = vpop.trf.xlu0  ;;  %1781 = vset.pattern.permute.xlu1 %v1882_v55  ;;  %811 = vperm.xlu0 %1791, %v2140_v58  }
  0xcb   :  { %1589 = vmatprep.mubr.msk.f32.mxu0 %vm138_vm8, %v134_v47  ;;  %863 = vperm.xlu1 %1781, %v726_v54  }
  0xce   :  { %v135_v48 = vpop.trf.xlu0  ;;  %1795 = vset.pattern.permute.xlu0 %v1883_v36 }
  0xcf   :  { %1590 = vmatmul.mubr.msk.f32.gmra.mrb[12].mxu0 %vm138_vm8, %v135_v48  ;;  %867 = vperm.xlu1 %1781, %v727_v56  }
  0xd0   :  { %1047 = vperm.xlu0 %1795, %v724_v51  }
  0xd2   :  { %v136_v49 = vpop.trf.xlu0 }
  0xd3   :  { %1592 = vmatprep.mubr.msk.f32.mxu0 %vm138_vm8, %v136_v49  ;;  %1782 = vset.pattern.permute.xlu1 %v1883_v36 }
  0xd4   :  { %1051 = vperm.xlu1 %1782, %v725_v52   ;;  %1059 = vperm.xlu0 %1795, %v727_v56   ;;  %v2258_v52 = vld [vmem:[%s2427_s1] ss:$0 sm:$0xff]  ;;  %v2436_v56 = vmov 1.0  }
  0xd5   :  { %2454 = vst [vmem:[#allocation18_spill] sm:$0xff] %v2258_v52  ;;  %vm1122_vm9 = vcmp.eq.s32.totalorder %v2258_v52, %v1952_v2 }
  0xd6   :  { %v137_v50 = vpop.trf.xlu0 }
  0xd7   :  { %1593 = vmatmul.mubr.msk.f32.gmra.mrb[14].mxu0 %vm138_vm8, %v137_v50 }
  0xd8   :  { %621 = vmatprep.mubr.f32.mxu0 %v1879_v1  ;;  %1783 = vset.pattern.permute.xlu1 %v1881_v53 }
  0xd9   :  { %959 = vperm.xlu1 %1783, %v726_v54   ;;  %1071 = vperm.xlu0 %1795, %v730_v57  }
  0xdd   :  { %1785 = vset.pattern.permute.xlu1 %v1880_v32  ;;  %1797 = vset.pattern.permute.xlu0 %v1881_v53 }
  0xde   :  { %786 = vperm.xlu1 %1785, %v728_v37   ;;  %975 = vperm.xlu0 %1797, %v730_v57  }
  0xe2   :  { %791 = vperm.xlu1 %1785, %v729_v25   ;;  %987 = vperm.xlu0 %1797, %v2140_v58  }
  0xe6   :  { %1786 = vset.pattern.permute.xlu1 %v1882_v55  ;;  %1801 = vset.pattern.permute.xlu0 %v1883_v36 }
  0xe7   :  { %875 = vperm.xlu1 %1786, %v729_v25  }
  0xeb   :  { %1787 = vset.pattern.permute.xlu1 %v1883_v36 }
  0xec   :  { %1055 = vperm.xlu1 %1787, %v726_v54  }
  0xf0   :  { %1788 = vset.pattern.permute.xlu1 %v1881_v53 }
  0xf1   :  { %967 = vperm.xlu1 %1788, %v728_v37  }
  0xf5   :  { %971 = vperm.xlu1 %1788, %v729_v25  }
  0xf9   :  { %1789 = vset.pattern.permute.xlu1 %v1880_v32 }
  0xfa   :  { %801 = vperm.xlu1 %1789, %v731_v31  }
  0xfe   :  { %1790 = vset.pattern.permute.xlu1 %v1882_v55 }
  0xff   :  { %879 = vperm.xlu1 %1790, %v730_v57  }
 0x103   :  { %1792 = vset.pattern.permute.xlu1 %v1883_v36 }
 0x104   :  { %1063 = vperm.xlu1 %1792, %v728_v37  }
 0x108   :  { %1067 = vperm.xlu1 %1792, %v729_v25  }
 0x10c   :  { %1793 = vset.pattern.permute.xlu1 %v1881_v53 }
 0x10d   :  { %979 = vperm.xlu1 %1793, %v731_v31  }
 0x111   :  { %1794 = vset.pattern.permute.xlu1 %v1880_v32  ;;  %v2172_v32 = vpop.permute.xlu1 %931 }
 0x112   :  { %806 = vperm.xlu1 %1794, %v732_v62  }
 0x115   :  { %v2179_v8 = vpop.permute.xlu1 %746 }
 0x116   :  { %1796 = vset.pattern.permute.xlu1 %v1882_v55 }
 0x117   :  { %887 = vperm.xlu1 %1796, %v732_v62  }
 0x11b   :  { %891 = vperm.xlu1 %1796, %v2140_v58  }
 0x11f   :  { %1798 = vset.pattern.permute.xlu1 %v1883_v36 }
 0x120   :  { %1075 = vperm.xlu1 %1798, %v731_v31  }
 0x124   :  { %1799 = vset.pattern.permute.xlu1 %v1881_v53  ;;  %v2184_v53 = vpop.permute.xlu1 %751 }
 0x125   :  { %983 = vperm.xlu1 %1799, %v732_v62  }
 0x128   :  { %v2189_v11 = vpop.permute.xlu1 %843 }
 0x129   :  { %1800 = vset.pattern.permute.xlu1 %v1883_v36 }
 0x12a   :  { %1079 = vperm.xlu1 %1800, %v732_v62   ;;  %v2275_v62 = vpop.permute.xlu0 %951 }
 0x12c   :  { %v2195_v14 = vpop.permute.xlu1 %1023 }
 0x12e   :  { %1083 = vperm.xlu1 %1800, %v2140_v58  }
 0x130   :  { %v2199_v17 = vpop.permute.xlu1 %1027 }
 0x134   :  { %v2205_v20 = vpop.permute.xlu1 %935 }
 0x138   :  { %v2209_v22 = vpop.permute.xlu1 %939 }
 0x13c   :  { %v2215_v29 = vpop.permute.xlu1 %756 }
 0x140   :  { %v2219_v34 = vpop.permute.xlu1 %761 }
 0x144   :  { %v2223_v35 = vpop.permute.xlu1 %847 }
 0x148   :  { %v2225_v38 = vpop.permute.xlu1 %851 }
 0x14c   :  { %v2227_v39 = vpop.permute.xlu1 %1031 }
 0x150   :  { %v2229_v40 = vpop.permute.xlu1 %1035 }
 0x154   :  { %v2231_v41 = vpop.permute.xlu1 %943 }
 0x158   :  { %v2233_v42 = vpop.permute.xlu1 %947 }
 0x15c   :  { %v2235_v43 = vpop.permute.xlu1 %766 }
 0x160   :  { %v2237_v44 = vpop.permute.xlu1 %771 }
 0x164   :  { %v2239_v45 = vpop.permute.xlu1 %855 }
 0x172   :  { %v1573_v0 = vpop.f32.mrb[0].mxu0 }
 0x173   :  { %v253_v6 = vpop.f32.mrb[1].mxu0 }
 0x174   :  { %461 = vmatmul.mubr.f32.vlgmr.msra.gmra.mrb[0].mxu1 %v253_v6  ;;  %622 = vmatmul.mubr.f32.vlgmr.msra.gmra.mrb[16].mxu0 %v253_v6  ;;  %v2279_v6 = vpop.permute.xlu0 %963 }
 0x175   :  { %466 = vmatprep.mubr.f32.mxu1 %v1879_v1  ;;  %627 = vmatprep.mubr.f32.mxu0 %v1879_v1 }
 0x178   :  { %467 = vmatmul.mubr.f32.gmra.mrb[2].mxu1 %v1573_v0  ;;  %628 = vmatmul.mubr.f32.gmra.mrb[18].mxu0 %v1573_v0 }
 0x179   :  { %472 = vmatprep.mubr.f32.mxu1 %v1879_v1  ;;  %633 = vmatprep.mubr.f32.mxu0 %v1879_v1 }
 0x17a   :  { %v1576_v55 = vpop.f32.mrb[2].mxu0 }
 0x17b   :  { %v263_v7 = vpop.f32.mrb[3].mxu0 }
 0x17c   :  { %473 = vmatmul.mubr.f32.gmra.mrb[4].mxu1 %v263_v7  ;;  %634 = vmatmul.mubr.f32.gmra.mrb[20].mxu0 %v263_v7 }
 0x17d   :  { %478 = vmatprep.mubr.f32.mxu1 %v1879_v1  ;;  %639 = vmatprep.mubr.f32.mxu0 %v1879_v1 }
 0x180   :  { %479 = vmatmul.mubr.f32.gmra.mrb[6].mxu1 %v1576_v55  ;;  %640 = vmatmul.mubr.f32.gmra.mrb[22].mxu0 %v1576_v55  ;;  %v840_v55 = vpop.permute.xlu0 %839 }
 0x181   :  { %484 = vmatprep.mubr.f32.mxu1 %v1879_v1  ;;  %645 = vmatprep.mubr.f32.mxu0 %v1879_v1 }
 0x182   :  { %v1579_v9 = vpop.f32.mrb[4].mxu0 }
 0x183   :  { %v273_v10 = vpop.f32.mrb[5].mxu0 }
 0x184   :  { %485 = vmatmul.mubr.f32.gmra.mrb[8].mxu1 %v273_v10  ;;  %646 = vmatmul.mubr.f32.gmra.mrb[24].mxu0 %v273_v10 }
 0x185   :  { %490 = vmatprep.mubr.f32.mxu1 %v1879_v1  ;;  %651 = vmatprep.mubr.f32.mxu0 %v1879_v1 }
 0x188   :  { %491 = vmatmul.mubr.f32.gmra.mrb[10].mxu1 %v1579_v9  ;;  %652 = vmatmul.mubr.f32.gmra.mrb[26].mxu0 %v1579_v9  ;;  %v2285_v9 = vpop.permute.xlu0 %871 }
 0x189   :  { %496 = vmatprep.mubr.f32.mxu1 %v1879_v1  ;;  %657 = vmatprep.mubr.f32.mxu0 %v1879_v1 }
 0x18a   :  { %v1582_v36 = vpop.f32.mrb[6].mxu0 }
 0x18b   :  { %v283_v13 = vpop.f32.mrb[7].mxu0 }
 0x18c   :  { %497 = vmatmul.mubr.f32.gmra.mrb[12].mxu1 %v283_v13  ;;  %658 = vmatmul.mubr.f32.gmra.mrb[28].mxu0 %v283_v13 }
 0x18d   :  { %502 = vmatprep.mubr.f32.mxu1 %v1879_v1  ;;  %663 = vmatprep.mubr.f32.mxu0 %v1879_v1 }
 0x190   :  { %503 = vmatmul.mubr.f32.gmra.mrb[14].mxu1 %v1582_v36  ;;  %664 = vmatmul.mubr.f32.gmra.mrb[30].mxu0 %v1582_v36  ;;  %v2289_v36 = vpop.permute.xlu0 %883 }
 0x191   :  { %508 = vmatprep.mubr.f32.mxu1 %v1879_v1  ;;  %669 = vmatprep.mubr.f32.mxu0 %v1879_v1  ;;  %2455 = vst [vmem:[#allocation19_spill] sm:$0xff] %v2289_v36 }
 0x192   :  { %v1585_v15 = vpop.f32.mrb[8].mxu0 }
 0x193   :  { %v293_v16 = vpop.f32.mrb[9].mxu0 }
 0x194   :  { %509 = vmatmul.mubr.f32.gmra.mrb[16].mxu1 %v293_v16  ;;  %670 = vmatmul.mubr.f32.gmra.mrb[32].mxu0 %v293_v16 }
 0x195   :  { %514 = vmatprep.mubr.f32.mxu1 %v1879_v1  ;;  %675 = vmatprep.mubr.f32.mxu0 %v1879_v1 }
 0x198   :  { %515 = vmatmul.mubr.f32.gmra.mrb[18].mxu1 %v1585_v15  ;;  %676 = vmatmul.mubr.f32.gmra.mrb[34].mxu0 %v1585_v15 }
 0x199   :  { %520 = vmatprep.mubr.f32.mxu1 %v1879_v1  ;;  %681 = vmatprep.mubr.f32.mxu0 %v1879_v1 }
 0x19a   :  { %v1588_v19 = vpop.f32.mrb[10].mxu0 }
 0x19b   :  { %v303_v21 = vpop.f32.mrb[11].mxu0 }
 0x19c   :  { %521 = vmatmul.mubr.f32.gmra.mrb[20].mxu1 %v303_v21  ;;  %682 = vmatmul.mubr.f32.gmra.mrb[36].mxu0 %v303_v21 }
 0x19d   :  { %526 = vmatprep.mubr.f32.mxu1 %v1879_v1  ;;  %687 = vmatprep.mubr.f32.mxu0 %v1879_v1 }
 0x1a0   :  { %527 = vmatmul.mubr.f32.gmra.mrb[22].mxu1 %v1588_v19  ;;  %688 = vmatmul.mubr.f32.gmra.mrb[38].mxu0 %v1588_v19 }
 0x1a1   :  { %532 = vmatprep.mubr.f32.mxu1 %v1879_v1  ;;  %693 = vmatprep.mubr.f32.mxu0 %v1879_v1 }
 0x1a2   :  { %v1591_v24 = vpop.f32.mrb[12].mxu0 }
 0x1a3   :  { %v313_v27 = vpop.f32.mrb[13].mxu0 }
 0x1a4   :  { %533 = vmatmul.mubr.f32.gmra.mrb[24].mxu1 %v313_v27  ;;  %694 = vmatmul.mubr.f32.gmra.mrb[40].mxu0 %v313_v27 }
 0x1a5   :  { %538 = vmatprep.mubr.f32.mxu1 %v1879_v1  ;;  %699 = vmatprep.mubr.f32.mxu0 %v1879_v1 }
 0x1a8   :  { %539 = vmatmul.mubr.f32.gmra.mrb[26].mxu1 %v1591_v24  ;;  %700 = vmatmul.mubr.f32.gmra.mrb[42].mxu0 %v1591_v24 }
 0x1a9   :  { %544 = vmatprep.mubr.f32.mxu1 %v1879_v1  ;;  %705 = vmatprep.mubr.f32.mxu0 %v1879_v1 }
 0x1aa   :  { %v1594_v30 = vpop.f32.mrb[14].mxu0 }
 0x1ab   :  { %v323_v33 = vpop.f32.mrb[15].mxu0 }
 0x1ac   :  { %545 = vmatmul.mubr.f32.gmra.mrb[28].mxu1 %v323_v33  ;;  %706 = vmatmul.mubr.f32.gmra.mrb[44].mxu0 %v323_v33 }
 0x1ad   :  { %550 = vmatprep.mubr.f32.mxu1 %v1879_v1  ;;  %711 = vmatprep.mubr.f32.mxu0 %v1879_v1  ;;  %v2241_v1 = vpop.permute.xlu1 %859 }
 0x1b0   :  { %551 = vmatmul.mubr.f32.gmra.mrb[30].mxu1 %v1594_v30  ;;  %712 = vmatmul.mubr.f32.gmra.mrb[46].mxu0 %v1594_v30  ;;  %v2295_v30 = vpop.permute.xlu0 %781 }
 0x1b1   :  { %v2243_v46 = vpop.permute.xlu1 %1039  ;;  %1627 = vmatprep.mubr.msk.f32.mxu1 %vm1122_vm9, %v2436_v56 }
 0x1b5   :  { %v2245_v47 = vpop.permute.xlu1 %1043 }
 0x1b9   :  { %v2247_v48 = vpop.permute.xlu1 %955 }
 0x1bd   :  { %v2249_v49 = vpop.permute.xlu1 %776 }
 0x1c1   :  { %v2251_v50 = vpop.permute.xlu1 %863 }
 0x1c5   :  { %v2253_v51 = vpop.permute.xlu1 %867 }
 0x1c9   :  { %v2260_v54 = vpop.permute.xlu1 %1051 }
 0x1cd   :  { %v2265_v37 = vpop.permute.xlu1 %959 }
 0x1d1   :  { %v2267_v31 = vpop.permute.xlu1 %786 }
 0x1d5   :  { %v2269_v25 = vpop.permute.xlu1 %791 }
 0x1d9   :  { %v2271_v57 = vpop.permute.xlu1 %875 }
 0x1dd   :  { %v2273_v58 = vpop.permute.xlu1 %1055 }
 0x1e1   :  { %v2277_v0 = vpop.permute.xlu1 %967 }
 0x1e5   :  { %v2281_v2 = vpop.permute.xlu1 %971 }
 0x1e9   :  { %v2283_v7 = vpop.permute.xlu1 %801 }
 0x1ed   :  { %v2287_v10 = vpop.permute.xlu1 %879 }
 0x1f1   :  { %v2291_v13 = vpop.permute.xlu1 %1063 }
 0x247   :  { %v462_v15 = vpop.f32.mrb[0].mxu1  ;;  %v623_v16 = vpop.f32.mrb[16].mxu0 }
 0x248   :  { %v814_v19 = vmul.f32 %v2150_v59, %v462_v15  ;;  %v464_v21 = vpop.f32.mrb[1].mxu1  ;;  %v625_v24 = vpop.f32.mrb[17].mxu0  ;;  %v990_v33 = vmul.f32 %v2166_v4, %v623_v16 }
 0x249   :  { %v894_v27 = vmul.f32 %v2157_v61, %v464_v21  ;;  %v1086_v52 = vmul.f32 %v2195_v14, %v625_v24  ;;  %v2301_v15 = vpop.permute.xlu1 %1067 }
 0x24b   :  { %v910_v56 = vadd.f32 %v894_v27, %v814_v19  ;;  %v468_v28 = vpop.f32.mrb[2].mxu1  ;;  %v629_v26 = vpop.f32.mrb[18].mxu0 }
 0x24c   :  { %v815_v23 = vmul.f32 %v2154_v60, %v468_v28  ;;  %v470_v18 = vpop.f32.mrb[3].mxu1  ;;  %v631_v12 = vpop.f32.mrb[19].mxu0  ;;  %v991_v61 = vmul.f32 %v2172_v32, %v629_v26 }
 0x24d   :  { %v1006_v5 = vadd.f32 %v990_v33, %v910_v56  ;;  %v895_v59 = vmul.f32 %v2163_v63, %v470_v18  ;;  %v1087_v60 = vmul.f32 %v2199_v17, %v631_v12  ;;  %v2306_v33 = vpop.permute.xlu0 %796  ;;  %v2308_v14 = vpop.permute.xlu1 %979 }
 0x24f   :  { %v1102_v3 = vadd.f32 %v1086_v52, %v1006_v5  ;;  %v911_v21 = vadd.f32 %v895_v59, %v815_v23  ;;  %v474_v36 = vpop.f32.mrb[4].mxu1  ;;  %v635_v4 = vpop.f32.mrb[20].mxu0 }
 0x250   :  { %v816_v16 = vmul.f32 %v2179_v8, %v474_v36  ;;  %v476_v19 = vpop.f32.mrb[5].mxu1  ;;  %v637_v27 = vpop.f32.mrb[21].mxu0  ;;  %v992_v5 = vmul.f32 %v2205_v20, %v635_v4 }
 0x251   :  { %v1007_v28 = vadd.f32 %v991_v61, %v911_v21  ;;  %v896_v56 = vmul.f32 %v840_v55, %v476_v19  ;;  %v1088_v24 = vmul.f32 %v2227_v39, %v637_v27  ;;  %v2318_v27 = vpop.permute.xlu0 %811 }
 0x253   :  { %v1103_v18 = vadd.f32 %v1087_v60, %v1007_v28  ;;  %v912_v63 = vadd.f32 %v896_v56, %v816_v16  ;;  %v480_v26 = vpop.f32.mrb[6].mxu1  ;;  %v641_v23 = vpop.f32.mrb[22].mxu0 }
 0x254   :  { %v817_v32 = vmul.f32 %v2184_v53, %v480_v26  ;;  %v482_v52 = vpop.f32.mrb[7].mxu1  ;;  %v643_v8 = vpop.f32.mrb[23].mxu0  ;;  %v993_v59 = vmul.f32 %v2209_v22, %v641_v23 }
 0x255   :  { %v1008_v36 = vadd.f32 %v992_v5, %v912_v63  ;;  %v897_v12 = vmul.f32 %v2189_v11, %v482_v52  ;;  %v1719_v17 = vpack.c.bf16 %v1103_v18, %v1102_v3  ;;  %v1089_v28 = vmul.f32 %v2229_v40, %v643_v8  ;;  %v2320_v3 = vpop.permute.xlu1 %806 }
 0x257   :  { %v1104_v55 = vadd.f32 %v1088_v24, %v1008_v36  ;;  %v913_v61 = vadd.f32 %v897_v12, %v817_v32  ;;  %v486_v21 = vpop.f32.mrb[8].mxu1  ;;  %v647_v19 = vpop.f32.mrb[24].mxu0  ;;  %1720 = vmatprep.subr.bf16.mxu1 %v1719_v17 }
 0x258   :  { %v818_v20 = vmul.f32 %v2215_v29, %v486_v21  ;;  %v488_v4 = vpop.f32.mrb[9].mxu1  ;;  %v649_v16 = vpop.f32.mrb[25].mxu0  ;;  %1722 = vmatpush3.bf16.msra.mxu1 %v1719_v17  ;;  %v994_v22 = vmul.f32 %v2231_v41, %v647_v19 }
 0x259   :  { %v1009_v53 = vadd.f32 %v993_v59, %v913_v61  ;;  %v898_v39 = vmul.f32 %v2223_v35, %v488_v4  ;;  %v1090_v23 = vmul.f32 %v2243_v46, %v649_v16  ;;  %v1048_v61 = vpop.permute.xlu0 %1047 }
 0x25b   :  { %v1105_v11 = vadd.f32 %v1089_v28, %v1009_v53  ;;  %v914_v60 = vadd.f32 %v898_v39, %v818_v20  ;;  %v492_v56 = vpop.f32.mrb[10].mxu1  ;;  %v653_v18 = vpop.f32.mrb[26].mxu0 }
 0x25c   :  { %v819_v29 = vmul.f32 %v2219_v34, %v492_v56  ;;  %v494_v5 = vpop.f32.mrb[11].mxu1  ;;  %v655_v63 = vpop.f32.mrb[27].mxu0  ;;  %v995_v52 = vmul.f32 %v2233_v42, %v653_v18 }
 0x25d   :  { %v1010_v26 = vadd.f32 %v994_v22, %v914_v60  ;;  %v899_v40 = vmul.f32 %v2225_v38, %v494_v5  ;;  %v1723_v35 = vpack.c.bf16 %v1105_v11, %v1104_v55  ;;  %v1091_v59 = vmul.f32 %v2245_v47, %v655_v63  ;;  %v2330_v38 = vpop.permute.xlu1 %887 }
 0x25f   :  { %v1106_v32 = vadd.f32 %v1090_v23, %v1010_v26  ;;  %v915_v8 = vadd.f32 %v899_v40, %v819_v29  ;;  %v498_v36 = vpop.f32.mrb[12].mxu1  ;;  %v659_v24 = vpop.f32.mrb[28].mxu0  ;;  %1724 = vmatprep.subr.bf16.mxu1 %v1723_v35 }
 0x260   :  { %v820_v41 = vmul.f32 %v2235_v43, %v498_v36  ;;  %v500_v12 = vpop.f32.mrb[13].mxu1  ;;  %v661_v17 = vpop.f32.mrb[29].mxu0  ;;  %1726 = vmatpush3.bf16.msra.mxu1 %v1723_v35  ;;  %v996_v42 = vmul.f32 %v2275_v62, %v659_v24 }
 0x261   :  { %v1011_v34 = vadd.f32 %v995_v52, %v915_v8  ;;  %v900_v46 = vmul.f32 %v2239_v45, %v500_v12  ;;  %v1092_v28 = vmul.f32 %v1048_v61, %v661_v17  ;;  %v1060_v26 = vpop.permute.xlu0 %1059 }
 0x263   :  { %v1107_v55 = vadd.f32 %v1091_v59, %v1011_v34  ;;  %v916_v21 = vadd.f32 %v900_v46, %v820_v41  ;;  %v504_v19 = vpop.f32.mrb[14].mxu1  ;;  %v665_v20 = vpop.f32.mrb[30].mxu0 }
 0x264   :  { %v821_v4 = vmul.f32 %v2237_v44, %v504_v19  ;;  %v506_v43 = vpop.f32.mrb[15].mxu1  ;;  %v667_v16 = vpop.f32.mrb[31].mxu0  ;;  %v997_v45 = vmul.f32 %v2247_v48, %v665_v20 }
 0x265   :  { %v1012_v53 = vadd.f32 %v996_v42, %v916_v21  ;;  %v901_v39 = vmul.f32 %v2241_v1, %v506_v43  ;;  %v1727_v47 = vpack.c.bf16 %v1107_v55, %v1106_v32  ;;  %v1093_v5 = vmul.f32 %v2260_v54, %v667_v16  ;;  %v2339_v1 = vpop.permute.xlu1 %891 }
 0x267   :  { %v1108_v11 = vadd.f32 %v1092_v28, %v1012_v53  ;;  %v917_v22 = vadd.f32 %v901_v39, %v821_v4  ;;  %v510_v60 = vpop.f32.mrb[16].mxu1  ;;  %v671_v56 = vpop.f32.mrb[32].mxu0  ;;  %1728 = vmatprep.subr.bf16.mxu1 %v1727_v47 }
 0x268   :  { %v822_v62 = vmul.f32 %v2249_v49, %v510_v60  ;;  %v512_v18 = vpop.f32.mrb[17].mxu1  ;;  %v673_v29 = vpop.f32.mrb[33].mxu0  ;;  %1730 = vmatpush3.bf16.msra.mxu1 %v1727_v47  ;;  %v998_v48 = vmul.f32 %v2265_v37, %v671_v56 }
 0x269   :  { %v1013_v44 = vadd.f32 %v997_v45, %v917_v22  ;;  %v902_v63 = vmul.f32 %v2251_v50, %v512_v18  ;;  %v1094_v24 = vmul.f32 %v2273_v58, %v673_v29  ;;  %v1072_v50 = vpop.permute.xlu0 %1071  ;;  %v2345_v12 = vpop.permute.xlu1 %1075 }
 0x26b   :  { %v1109_v23 = vadd.f32 %v1093_v5, %v1013_v44  ;;  %v918_v40 = vadd.f32 %v902_v63, %v822_v62  ;;  %v516_v35 = vpop.f32.mrb[18].mxu1  ;;  %v677_v32 = vpop.f32.mrb[34].mxu0 }
 0x26c   :  { %v823_v52 = vmul.f32 %v2295_v30, %v516_v35  ;;  %v518_v49 = vpop.f32.mrb[19].mxu1  ;;  %v679_v8 = vpop.f32.mrb[35].mxu0  ;;  %v999_v34 = vmul.f32 %v2279_v6, %v677_v32 }
 0x26d   :  { %v1014_v36 = vadd.f32 %v998_v48, %v918_v40  ;;  %v903_v54 = vmul.f32 %v2253_v51, %v518_v49  ;;  %v1731_v41 = vpack.c.bf16 %v1109_v23, %v1108_v11  ;;  %v1095_v58 = vmul.f32 %v1060_v26, %v679_v8  ;;  %v976_v11 = vpop.permute.xlu0 %975  ;;  %v984_v45 = vpop.permute.xlu1 %983 }
 0x26f   :  { %v1110_v17 = vadd.f32 %v1094_v24, %v1014_v36  ;;  %v919_v37 = vadd.f32 %v903_v54, %v823_v52  ;;  %v522_v59 = vpop.f32.mrb[20].mxu1  ;;  %v683_v46 = vpop.f32.mrb[36].mxu0  ;;  %1732 = vmatprep.subr.bf16.mxu1 %v1731_v41 }
 0x270   :  { %v824_v30 = vmul.f32 %v2267_v31, %v522_v59  ;;  %v524_v61 = vpop.f32.mrb[21].mxu1  ;;  %v685_v55 = vpop.f32.mrb[37].mxu0  ;;  %1734 = vmatpush3.bf16.msra.mxu1 %v1731_v41  ;;  %v1000_v19 = vmul.f32 %v2277_v0, %v683_v46 }
 0x271   :  { %v1015_v42 = vadd.f32 %v999_v34, %v919_v37  ;;  %v904_v51 = vmul.f32 %v2285_v9, %v524_v61  ;;  %v1096_v31 = vmul.f32 %v2291_v13, %v685_v55  ;;  %v1080_v8 = vpop.permute.xlu1 %1079  ;;  %v988_v59 = vpop.permute.xlu0 %987 }
 0x273   :  { %v1111_v21 = vadd.f32 %v1095_v58, %v1015_v42  ;;  %v920_v20 = vadd.f32 %v904_v51, %v824_v30  ;;  %v528_v4 = vpop.f32.mrb[22].mxu1  ;;  %v689_v43 = vpop.f32.mrb[38].mxu0 }
 0x274   :  { %v825_v6 = vmul.f32 %v2269_v25, %v528_v4  ;;  %v530_v16 = vpop.f32.mrb[23].mxu1  ;;  %v691_v53 = vpop.f32.mrb[39].mxu0  ;;  %v1001_v9 = vmul.f32 %v2281_v2, %v689_v43 }
 0x275   :  { %v1016_v28 = vadd.f32 %v1000_v19, %v920_v20  ;;  %v905_v39 = vmul.f32 %v2271_v57, %v530_v16  ;;  %v1735_v47 = vpack.c.bf16 %v1111_v21, %v1110_v17  ;;  %v1097_v13 = vmul.f32 %v2301_v15, %v691_v53  ;;  %v1084_v4 = vpop.permute.xlu1 %1083 }
 0x277   :  { %v1112_v22 = vadd.f32 %v1096_v31, %v1016_v28  ;;  %v921_v60 = vadd.f32 %v905_v39, %v825_v6  ;;  %v534_v0 = vpop.f32.mrb[24].mxu1  ;;  %v695_v56 = vpop.f32.mrb[40].mxu0  ;;  %1736 = vmatprep.subr.bf16.mxu1 %v1735_v47  ;;  %v2457_v31 = vld [vmem:[#allocation11_spill] sm:$0xff]  ;;  %v2459_v39 = vld [vmem:[#allocation12_spill] sm:$0xff] }
 0x278   :  { %v826_v62 = vmul.f32 %v2306_v33, %v534_v0  ;;  %v536_v25 = vpop.f32.mrb[25].mxu1  ;;  %v697_v18 = vpop.f32.mrb[41].mxu0  ;;  %1738 = vmatpush3.bf16.msra.mxu1 %v1735_v47  ;;  %v1002_v5 = vmul.f32 %v976_v11, %v695_v56  ;;  %v2456_v33 = vld [vmem:[#allocation19_spill] sm:$0xff]  ;;  %v2461_v47 = vld [vmem:[#allocation13_spill] sm:$0xff]  ;;  %v2462_v11 = vld [vmem:[#allocation14_spill] sm:$0xff] }
 0x279   :  { %v1017_v29 = vadd.f32 %v1001_v9, %v921_v60  ;;  %v906_v57 = vmul.f32 %v2287_v10, %v536_v25  ;;  %v1098_v32 = vmul.f32 %v1072_v50, %v697_v18  ;;  %v2465_v9 = vld [vmem:[#allocation17_spill] sm:$0xff] }
 0x27b   :  { %v1113_v44 = vadd.f32 %v1097_v13, %v1017_v29  ;;  %v922_v63 = vadd.f32 %v906_v57, %v826_v62  ;;  %v540_v26 = vpop.f32.mrb[26].mxu1  ;;  %v701_v23 = vpop.f32.mrb[42].mxu0 }
 0x27c   :  { %v827_v2 = vmul.f32 %v2283_v7, %v540_v26  ;;  %v542_v48 = vpop.f32.mrb[27].mxu1  ;;  %v703_v40 = vpop.f32.mrb[43].mxu0  ;;  %v1003_v15 = vmul.f32 %v2308_v14, %v701_v23 }
 0x27d   :  { %v1018_v35 = vadd.f32 %v1002_v5, %v922_v63  ;;  %v907_v52 = vmul.f32 %v2456_v33, %v542_v48  ;;  %v1739_v49 = vpack.c.bf16 %v1113_v44, %v1112_v22  ;;  %v1099_v37 = vmul.f32 %v2345_v12, %v703_v40  ;;  %v2464_v22 = vld [vmem:[#allocation16_spill] sm:$0xff] }
 0x27f   :  { %v1114_v36 = vadd.f32 %v1098_v32, %v1018_v35  ;;  %v923_v24 = vadd.f32 %v907_v52, %v827_v2  ;;  %v546_v10 = vpop.f32.mrb[28].mxu1  ;;  %v707_v54 = vpop.f32.mrb[44].mxu0  ;;  %1740 = vmatprep.subr.bf16.mxu1 %v1739_v49 }
 0x280   :  { %v828_v41 = vmul.f32 %v2320_v3, %v546_v10  ;;  %v548_v17 = vpop.f32.mrb[29].mxu1  ;;  %v709_v34 = vpop.f32.mrb[45].mxu0  ;;  %1742 = vmatpush3.bf16.msra.mxu1 %v1739_v49  ;;  %v1004_v30 = vmul.f32 %v984_v45, %v707_v54  ;;  %v2463_v45 = vld [vmem:[#allocation15_spill] sm:$0xff] }
 0x281   :  { %v1019_v7 = vadd.f32 %v1003_v15, %v923_v24  ;;  %v908_v50 = vmul.f32 %v2330_v38, %v548_v17  ;;  %v1100_v3 = vmul.f32 %v1080_v8, %v709_v34 }
 0x283   :  { %v1115_v46 = vadd.f32 %v1099_v37, %v1019_v7  ;;  %v924_v61 = vadd.f32 %v908_v50, %v828_v41  ;;  %v552_v55 = vpop.f32.mrb[30].mxu1  ;;  %v713_v14 = vpop.f32.mrb[46].mxu0 }
 0x284   :  { %v829_v42 = vmul.f32 %v2318_v27, %v552_v55  ;;  %v554_v58 = vpop.f32.mrb[31].mxu1  ;;  %v715_v51 = vpop.f32.mrb[47].mxu0  ;;  %v1005_v12 = vmul.f32 %v988_v59, %v713_v14  ;;  %v2458_v27 = vld [vmem:[#allocation18_spill] sm:$0xff] }
 0x285   :  { %v1020_v21 = vadd.f32 %v1004_v30, %v924_v61  ;;  %v909_v19 = vmul.f32 %v2339_v1, %v554_v58  ;;  %v1743_v20 = vpack.c.bf16 %v1115_v46, %v1114_v36  ;;  %v1101_v16 = vmul.f32 %v1084_v4, %v715_v51 }
 0x286   :  { %vm1123_vm10 = vcmp.eq.s32.totalorder %v2458_v27, %v2457_v31  ;;  %vm1124_vm11 = vcmp.eq.s32.totalorder %v2458_v27, %v2459_v39  ;;  %v2460_v1 = vmov 1.0   ;;  %vm1125_vm12 = vcmp.eq.s32.totalorder %v2458_v27, %v2461_v47 }
 0x287   :  { %v1116_v43 = vadd.f32 %v1100_v3, %v1020_v21  ;;  %v925_v6 = vadd.f32 %v909_v19, %v829_v42  ;;  %1744 = vmatprep.subr.bf16.mxu1 %v1743_v20  ;;  %vm1126_vm13 = vcmp.eq.s32.totalorder %v2458_v27, %v2462_v11  ;;  %vm1127_vm14 = vcmp.eq.s32.totalorder %v2458_v27, %v2463_v45 }
 0x288   :  { %1746 = vmatpush3.bf16.msra.mxu1 %v1743_v20  ;;  %vm1128_vm15 = vcmp.eq.s32.totalorder %v2458_v27, %v2464_v22  ;;  %vm1129_vm0 = vcmp.eq.s32.totalorder %v2458_v27, %v2465_v9 }
 0x289   :  { %v1021_v38 = vadd.f32 %v1005_v12, %v925_v6 }
 0x28b   :  { %v1117_v53 = vadd.f32 %v1101_v16, %v1021_v38 }
 0x28d   :  { %v1747_v28 = vpack.c.bf16 %v1117_v53, %v1116_v43 }
 0x28f   :  { %1748 = vmatprep.subr.bf16.mxu1 %v1747_v28 }
 0x290   :  { %1750 = vmatpush3.bf16.msra.mxu1 %v1747_v28 }
 0x293   :  { %1628 = vmatmul.mubr.msk.f32.vlgmr.msra.gmra.mrb[32].mxu1 %vm1123_vm10, %v2460_v1 }
 0x294   :  { %1630 = vmatprep.mubr.msk.f32.mxu1 %vm1124_vm11, %v2460_v1 }
 0x297   :  { %1631 = vmatmul.mubr.msk.f32.gmra.mrb[34].mxu1 %vm1125_vm12, %v2460_v1 }
 0x298   :  { %1633 = vmatprep.mubr.msk.f32.mxu1 %vm1126_vm13, %v2460_v1 }
 0x29b   :  { %1634 = vmatmul.mubr.msk.f32.gmra.mrb[36].mxu1 %vm1127_vm14, %v2460_v1 }
 0x29c   :  { %1636 = vmatprep.mubr.msk.f32.mxu1 %vm1128_vm15, %v2460_v1 }
 0x29f   :  { %1637 = vmatmul.mubr.msk.f32.gmra.mrb[38].mxu1 %vm1129_vm0, %v2460_v1 }
 0x366   :  { %v1629_v60 = vpop.f32.mrb[32].mxu1 }
 0x367   :  { %v1220_v0 = vpop.f32.mrb[33].mxu1  ;;  %v1287_v56 = vmax.f32 %v1629_v60, 0.0 }
 0x368   :  { %v1286_v25 = vmax.f32 %v1220_v0, 0.0 }
 0x36a   :  { %v1632_v62 = vpop.f32.mrb[34].mxu1  ;;  %v1294_v29 = vadd.f32 %v1287_v56, %v1286_v25 }
 0x36b   :  { %v1230_v18 = vpop.f32.mrb[35].mxu1  ;;  %v1289_v5 = vmax.f32 %v1632_v62, 0.0 }
 0x36c   :  { %v1288_v57 = vmax.f32 %v1230_v18, 0.0 }
 0x36e   :  { %v1635_v13 = vpop.f32.mrb[36].mxu1  ;;  %v1295_v63 = vadd.f32 %v1294_v29, %v1288_v57 }
 0x36f   :  { %v1240_v44 = vpop.f32.mrb[37].mxu1  ;;  %v1291_v40 = vmax.f32 %v1635_v13, 0.0  ;;  %v1505_v13 = vld [vmem:[%s2432_s6] ss:$0 sm:$0xff] }
 0x370   :  { %v1290_v23 = vmax.f32 %v1240_v44, 0.0  ;;  %v1296_v2 = vadd.f32 %v1295_v63, %v1289_v5 }
 0x372   :  { %v1638_v26 = vpop.f32.mrb[38].mxu1  ;;  %v1297_v35 = vadd.f32 %v1296_v2, %v1290_v23 }
 0x373   :  { %v1250_v48 = vpop.f32.mrb[39].mxu1  ;;  %v1293_v52 = vmax.f32 %v1638_v26, 0.0 }
 0x374   :  { %v1292_v32 = vmax.f32 %v1250_v48, 0.0  ;;  %v1298_v33 = vadd.f32 %v1297_v35, %v1291_v40 }
 0x376   :  { %v1299_v49 = vadd.f32 %v1298_v33, %v1292_v32 }
 0x378   :  { %v1300_v8 = vadd.f32 %v1299_v49, %v1293_v52 }
 0x37a   :  { %v1301_v36 = vrot.slane %v1300_v8, 4 }
 0x37c   :  { %v1302_v15 = vadd.f32 %v1301_v36, %v1300_v8 }
 0x37e   :  { %v1303_v24 = vrot.slane %v1302_v15, 2 }
 0x380   :  { %v1304_v10 = vadd.f32 %v1303_v24, %v1302_v15 }
 0x382   :  { %v1305_v54 = vrot.slane %v1304_v10, 1 }
 0x384   :  { %v1306_v41 = vadd.f32 %v1305_v54, %v1304_v10 }
 0x386   :  { %v1307_v17 = vmul.f32 0.015625, %v1306_v41 }
 0x388   :  { %v1308_v34 = vsub.f32 %v1286_v25, %v1307_v17  ;;  %v1309_v7 = vsub.f32 %v1287_v56, %v1307_v17  ;;  %v1310_v37 = vsub.f32 %v1288_v57, %v1307_v17  ;;  %v1311_v50 = vsub.f32 %v1289_v5, %v1307_v17  ;;  %v1504_v56 = vld [vmem:[%s2431_s5] ss:$0 sm:$0xff]  ;;  %s1885_s5 = smov [#allocation5]  }
 0x389   :  { %v1312_v59 = vsub.f32 %v1290_v23, %v1307_v17  ;;  %v1313_v46 = vsub.f32 %v1291_v40, %v1307_v17  ;;  %v1314_v30 = vsub.f32 %v1292_v32, %v1307_v17  ;;  %v1315_v61 = vsub.f32 %v1293_v52, %v1307_v17  ;;  %v1506_v40 = vld [vmem:[%s2433_s7] ss:$0 sm:$0xff]  ;;  %s1434_s6 = sshll.u32 %s1885_s5, 4  ;;  %s1435_s6 = int_to_ptr.vmem [resolvable:$true] %s1434_s6 }
 0x38a   :  { %v1316_v55 = vmul.f32 %v1308_v34, %v1308_v34  ;;  %v1317_v14 = vmul.f32 %v1309_v7, %v1309_v7  ;;  %v1318_v42 = vmul.f32 %v1310_v37, %v1310_v37  ;;  %v1319_v51 = vmul.f32 %v1311_v50, %v1311_v50  ;;  %s1826_s7 = scalar_lea.vmem %s1435_s6, 1024  ;;  %p1831_p9 = scmp.lt.s32.totalorder %s1435_s6, %s1435_s6 }
 0x38b   :  { %v1320_v3 = vmul.f32 %v1312_v59, %v1312_v59  ;;  %v1321_v20 = vmul.f32 %v1313_v46, %v1313_v46  ;;  %v1322_v43 = vmul.f32 %v1314_v30, %v1314_v30  ;;  %v1323_v6 = vmul.f32 %v1315_v61, %v1315_v61  ;;  %p1827_p8 = scmp.ne.s32.totalorder %s1435_s6, %s1826_s7  ;;  %p1832_p10 = scmp.lt.s32.totalorder %s1826_s7, %s1826_s7 }
 0x38c   :  { %v1324_v58 = vadd.f32 %v1317_v14, %v1316_v55  ;;  %v1337_v39 = vmul.f32 0.0, %v1307_v17 }
 0x38d   :  { %p1833_p11 = por %p1832_p10, %p1831_p9 }
 0x38e   :  { %v1325_v21 = vadd.f32 %v1324_v58, %v1318_v42  ;;  %v1338_v11 = vmul.f32 %v1337_v39, %v1307_v17 }
 0x38f   :  { %p1834_p12 = pnand %p1833_p11, %p1827_p8 }
 0x390   :  { %v1326_v19 = vadd.f32 %v1325_v21, %v1319_v51 }
 0x392   :  { %v1327_v4 = vadd.f32 %v1326_v19, %v1320_v3 }
 0x394   :  { %v1328_v12 = vadd.f32 %v1327_v4, %v1321_v20 }
 0x396   :  { %v1329_v38 = vadd.f32 %v1328_v12, %v1322_v43 }
 0x398   :  { %v1330_v16 = vadd.f32 %v1329_v38, %v1323_v6 }
 0x39a   :  { %v1331_v53 = vrot.slane %v1330_v16, 4 }
 0x39c   :  { %v1332_v28 = vadd.f32 %v1331_v53, %v1330_v16 }
 0x39e   :  { %v1333_v31 = vrot.slane %v1332_v28, 2 }
 0x3a0   :  { %v1334_v27 = vadd.f32 %v1333_v31, %v1332_v28 }
 0x3a2   :  { %v1335_v1 = vrot.slane %v1334_v27, 1 }
 0x3a4   :  { %v1336_v47 = vadd.f32 %v1335_v1, %v1334_v27 }
 0x3a6   :  { %v1339_v45 = vsub.f32 %v1336_v47, %v1338_v11 }
 0x3a8   :  { %v1340_v22 = vmul.f32 0.015625, %v1339_v45 }
 0x3aa   :  { %v1341_v9 = vmax.f32 %v1340_v22, 0.0 }
 0x3ac   :  { %v1342_v60 = vadd.f32 1e-05, %v1341_v9 }
 0x3ae   :  { %1802 = vrsqrt.f32 %v1342_v60 }
 0x3b8   :  { %v1803_v0 = vpop.eup %1802 }
 0x3b9   :  { %v1345_v62 = vmul.f32 %v1803_v0, %v1309_v7  ;;  %v1344_v25 = vmul.f32 %v1803_v0, %v1308_v34  ;;  %v1349_v18 = vmul.f32 %v1803_v0, %v1313_v46  ;;  %v1346_v29 = vmul.f32 %v1803_v0, %v1310_v37 }
 0x3ba   :  { %v1351_v57 = vmul.f32 %v1803_v0, %v1315_v61  ;;  %v1347_v44 = vmul.f32 %v1803_v0, %v1311_v50  ;;  %v1348_v5 = vmul.f32 %v1803_v0, %v1312_v59  ;;  %v1350_v63 = vmul.f32 %v1803_v0, %v1314_v30 }
 0x3bb   :  { %v1360_v26 = vmul.f32 %v1504_v56, %v1345_v62  ;;  %v1359_v23 = vmul.f32 %v1504_v56, %v1344_v25  ;;  %v1364_v2 = vmul.f32 %v1504_v56, %v1349_v18  ;;  %v1361_v48 = vmul.f32 %v1504_v56, %v1346_v29 }
 0x3bc   :  { %v1366_v35 = vmul.f32 %v1504_v56, %v1351_v57  ;;  %v1362_v32 = vmul.f32 %v1504_v56, %v1347_v44  ;;  %v1363_v33 = vmul.f32 %v1504_v56, %v1348_v5  ;;  %v1365_v52 = vmul.f32 %v1504_v56, %v1350_v63 }
 0x3bd   :  { %v1375_v49 = vadd.f32 %v1505_v13, %v1360_v26  ;;  %v1374_v8 = vadd.f32 %v1505_v13, %v1359_v23  ;;  %v1379_v36 = vadd.f32 %v1505_v13, %v1364_v2  ;;  %v1376_v15 = vadd.f32 %v1505_v13, %v1361_v48 }
 0x3be   :  { %v1381_v24 = vadd.f32 %v1505_v13, %v1366_v35  ;;  %v1377_v10 = vadd.f32 %v1505_v13, %v1362_v32  ;;  %v1378_v54 = vadd.f32 %v1505_v13, %v1363_v33  ;;  %v1380_v41 = vadd.f32 %v1505_v13, %v1365_v52 }
 0x3bf   :  { %v1398_v17 = vmul.f32 %v1506_v40, %v1375_v49  ;;  %1383 = vst [vmem:[#allocation5 + $0x8] sm:$0xff] %v1375_v49  ;;  %v1397_v34 = vmul.f32 %v1506_v40, %v1374_v8  ;;  %1382 = vst [vmem:[#allocation5] sm:$0xff] %v1374_v8  ;;  %v1402_v7 = vmul.f32 %v1506_v40, %v1379_v36 }
 0x3c0   :  { %1387 = vst [vmem:[#allocation5 + $0x28] sm:$0xff] %v1379_v36  ;;  %1384 = vst [vmem:[#allocation5 + $0x10] sm:$0xff] %v1376_v15  ;;  %v1399_v37 = vmul.f32 %v1506_v40, %v1376_v15  ;;  %v1404_v50 = vmul.f32 %v1506_v40, %v1381_v24  ;;  %v1400_v59 = vmul.f32 %v1506_v40, %v1377_v10 }
 0x3c1   :  { %1389 = vst [vmem:[#allocation5 + $0x38] sm:$0xff] %v1381_v24  ;;  %1385 = vst [vmem:[#allocation5 + $0x18] sm:$0xff] %v1377_v10  ;;  %1407 = vadd.xlane.f32.xlu1 %v1398_v17  ;;  %1405 = vadd.xlane.f32.xlu0 %v1397_v34  ;;  %v1401_v46 = vmul.f32 %v1506_v40, %v1378_v54  ;;  %v1403_v30 = vmul.f32 %v1506_v40, %v1380_v41 }
 0x3c2   :  { %1386 = vst [vmem:[#allocation5 + $0x20] sm:$0xff] %v1378_v54  ;;  %1388 = vst [vmem:[#allocation5 + $0x30] sm:$0xff] %v1380_v41 }
 0x3c5   :  { %1415 = vadd.xlane.f32.xlu1 %v1402_v7  ;;  %1409 = vadd.xlane.f32.xlu0 %v1399_v37 }
 0x3c9   :  { %1419 = vadd.xlane.f32.xlu1 %v1404_v50  ;;  %1411 = vadd.xlane.f32.xlu0 %v1400_v59 }
 0x3cd   :  { %1413 = vadd.xlane.f32.xlu0 %v1401_v46 }
 0x3d1   :  { %1417 = vadd.xlane.f32.xlu0 %v1403_v30 }
 0x3d2   :  { %1837 = shalt.err (!%p1834_p12)
}
 0x3d3   :  { %s1838_s10 = scalar_lea.hbm %s2434_s8, 1024 }
 0x3d4   :  { %p1839_p13 = scmp.ne.s32.totalorder %s2434_s8, %s1838_s10  ;;  %p1842_p0 = scmp.lt.u32.totalorder %s1838_s10, %s2434_s8 }
 0x3d6   :  { %p1844_p1 = pnand %p1842_p0, %p1839_p13 }
 0x3d8   :  { %1847 = shalt.err (!%p1844_p1)
}
 0x3d9   :  { %s1886_s15 = smov 128   ;;  %s1887_s16 = smov 8  }
 0x3da   :  { %1440 = dma.vmem_to_hbm [thread:$0]  %s1435_s6, 1024, %s2434_s8, [#allocation4], %s1886_s15, %s1886_s15, %s1887_s16  }
 0x3db   :  { %s1888_s18 = smov [#allocation6]  }
 0x3dc   :  { %s1446_s19 = sshll.u32 %s1888_s18, 4  ;;  %s1447_s19 = int_to_ptr.vmem [resolvable:$true] %s1446_s19 }
 0x3dd   :  { %s1848_s8 = scalar_lea.vmem %s1447_s19, 1024  ;;  %p1853_p3 = scmp.lt.s32.totalorder %s1447_s19, %s1447_s19 }
 0x3de   :  { %p1849_p2 = scmp.ne.s32.totalorder %s1447_s19, %s1848_s8  ;;  %p1854_p4 = scmp.lt.s32.totalorder %s1848_s8, %s1848_s8 }
 0x3e0   :  { %p1855_p5 = por %p1854_p4, %p1853_p3 }
 0x3e2   :  { %p1856_p6 = pnand %p1855_p5, %p1849_p2 }
 0x44e   :  { %v1408_v61 = vpop.xlane.xlu1 %1407  ;;  %v1406_v55 = vpop.xlane.xlu0 %1405 }
 0x44f   :  { %1422 = vst [vmem:[#allocation6 + $0x8] sm:$0xff] %v1408_v61  ;;  %1421 = vst [vmem:[#allocation6] sm:$0xff] %v1406_v55 }
 0x452   :  { %v1416_v14 = vpop.xlane.xlu1 %1415  ;;  %v1410_v42 = vpop.xlane.xlu0 %1409 }
 0x453   :  { %1426 = vst [vmem:[#allocation6 + $0x28] sm:$0xff] %v1416_v14  ;;  %1423 = vst [vmem:[#allocation6 + $0x10] sm:$0xff] %v1410_v42 }
 0x456   :  { %v1420_v58 = vpop.xlane.xlu1 %1419  ;;  %v1412_v51 = vpop.xlane.xlu0 %1411 }
 0x457   :  { %1428 = vst [vmem:[#allocation6 + $0x38] sm:$0xff] %v1420_v58  ;;  %1424 = vst [vmem:[#allocation6 + $0x18] sm:$0xff] %v1412_v51 }
 0x45a   :  { %v1414_v21 = vpop.xlane.xlu0 %1413 }
 0x45b   :  { %1425 = vst [vmem:[#allocation6 + $0x20] sm:$0xff] %v1414_v21 }
 0x45e   :  { %v1418_v3 = vpop.xlane.xlu0 %1417 }
 0x45f   :  { %1427 = vst [vmem:[#allocation6 + $0x30] sm:$0xff] %v1418_v3 }
 0x460   :  { %1859 = shalt.err (!%p1856_p6)
}
 0x461   :  { %s1860_s22 = scalar_lea.hbm %s2435_s9, 1024 }
 0x462   :  { %p1861_p7 = scmp.ne.s32.totalorder %s2435_s9, %s1860_s22  ;;  %p1864_p8 = scmp.lt.u32.totalorder %s1860_s22, %s2435_s9 }
 0x464   :  { %p1866_p9 = pnand %p1864_p8, %p1861_p7 }
 0x466   :  { %1869 = shalt.err (!%p1866_p9)
}
 0x467   :  { %1452 = dma.vmem_to_hbm [thread:$0]  %s1447_s19, 1024, %s2435_s9, [#allocation7], %s1886_s15, %s1886_s15, %s1887_s16  }
 0x468   :  { %1872 = dma.done.wait [#allocation4], 1024  }
 0x469   :  { %1873 = vsyncadd [#allocation4], 4294966272 }
 0x46a   :  { %1874 = dma.done.wait [#allocation7], 1024  }
 0x46b   :  { %1875 = vsyncadd [#allocation7], 4294966272 }
 0x46c   :  { %1459 = vsyncpa [#allocation3], 1 }
 0x46d   :  { %1460 = vsyncpa [#allocation4], 1 }
 0x46e   :  { %1461 = vsyncpa [#allocation7], 1 }

</bundles_post_ra>
